<compile_context>
chip_gen: v6e
topology: v6e:2x2x1
jax: 0.10.0
libtpu: 0.0.40
codegen_flags: <defaults>
</compile_context>

<pallas_src>
import math

import jax
import jax.numpy as jnp
from jax import lax
from jax.experimental import pallas as pl
from jax.experimental.pallas import tpu as pltpu


_BLOCK_KEYS = ('ln1_g', 'ln1_b', 'w_qkv', 'b_qkv', 'w_o', 'b_o',
               'ln2_g', 'ln2_b', 'w_fc', 'b_fc', 'w_proj', 'b_proj')


# ---------------------------- in-kernel helpers ----------------------------

def _ln(x, g, b):
    """LayerNorm in f32. x: [T, D]; g, b: [1, D]."""
    mu = jnp.mean(x, axis=-1, keepdims=True)
    xc = x - mu
    var = jnp.mean(xc * xc, axis=-1, keepdims=True)
    return xc * lax.rsqrt(var + 1e-5) * g + b


def _mm(a_bf16, b_bf16):
    """MXU matmul; operands are already bf16, accumulation in f32."""
    return jnp.dot(a_bf16, b_bf16, preferred_element_type=jnp.float32)


def _block_diag_mask(T, seg, causal):
    """allowed[i, j]: i and j in the same length-`seg` segment (and j<=i when
    causal).  Built in-kernel from iota compares — never shipped through HBM,
    no vector integer division."""
    i = lax.broadcasted_iota(jnp.int32, (T, T), 0)
    j = lax.broadcasted_iota(jnp.int32, (T, T), 1)
    allowed = None
    for b in range(T // seg):
        lo, hi = b * seg, (b + 1) * seg
        blk = jnp.logical_and(jnp.logical_and(i >= lo, i < hi),
                              jnp.logical_and(j >= lo, j < hi))
        allowed = blk if allowed is None else jnp.logical_or(allowed, blk)
    if causal:
        allowed = jnp.logical_and(allowed, j <= i)
    return allowed


def _block_compute(x, refs, *, heads, allowed):
    """Pre-LN transformer block on flattened rows. x: [T, D] f32;
    allowed: [T, T] bool block-diagonal attention mask."""
    T, D = x.shape
    Dh = D // heads
    scale = jnp.float32(1.0 / (Dh ** 0.5))
    bf = jnp.bfloat16

    y = _ln(x, refs['ln1_g'][...], refs['ln1_b'][...]).astype(bf)

    # ONE fused [T,D]x[D,3D] QKV matmul + single [1,3D] bias add; cast to bf16
    # once and reuse for both the score and PV matmuls.
    qkv = (_mm(y, refs['w_qkv'][...]) + refs['b_qkv'][...]).astype(bf)    # [T,3D]

    # Head-batched attention: [H,T,Dh] stacks from static lane slices.
    q = jnp.stack([qkv[:, h * Dh:(h + 1) * Dh] for h in range(heads)], axis=0)
    k = jnp.stack([qkv[:, D + h * Dh:D + (h + 1) * Dh] for h in range(heads)], axis=0)
    v = jnp.stack([qkv[:, 2 * D + h * Dh:2 * D + (h + 1) * Dh] for h in range(heads)], axis=0)

    s = jnp.einsum('hsd,htd->hst', q, k,
                   preferred_element_type=jnp.float32) * scale            # [H,T,T]
    s = jnp.where(allowed[None, :, :], s, -jnp.inf)        # one select, all heads
    m = jnp.max(s, axis=-1, keepdims=True)
    p = jnp.exp(s - m)
    # approx reciprocal runs on the EUP slot; ~1e-3 relative softmax deviation
    p = p * pl.reciprocal(jnp.sum(p, axis=-1, keepdims=True), approx=True)
    o = jnp.einsum('hst,htd->hsd', p.astype(bf), v,
                   preferred_element_type=jnp.float32)                    # [H,T,Dh]

    # Head merge (static lane concat) + ONE full-width [T,D]x[D,D] out-proj.
    attn = jnp.concatenate([o[h] for h in range(heads)], axis=-1).astype(bf)
    x = x + _mm(attn, refs['w_o'][...]) + refs['b_o'][...]                # residual

    y = _ln(x, refs['ln2_g'][...], refs['ln2_b'][...]).astype(bf)
    h1 = _mm(y, refs['w_fc'][...]) + refs['b_fc'][...]
    h1 = h1 * jax.nn.sigmoid(1.702 * h1)                   # QuickGELU (f32, EUP)
    x = x + _mm(h1.astype(bf), refs['w_proj'][...]) + refs['b_proj'][...]  # residual
    return x


# ---------------------------- fused kernels ----------------------------

def _make_image_head_kernel(heads, B, S):
    nblk = len(_BLOCK_KEYS)

    def kernel(patches_ref, w_patch_ref, cls_pos_ref, lnpre_g_ref, lnpre_b_ref, *rest):
        blk = dict(zip(_BLOCK_KEYS, rest[:nblk]))
        lnpost_g_ref, lnpost_b_ref, w_out_ref, txt_ref, scale_ref, o_ref = rest[nblk:]

        # patch "conv" for the whole batch at once ([B*S, CPP] x [CPP, D]);
        # row b*S is a zero pseudo-patch so cls_pos (pos_emb with the class
        # embedding folded into row 0) yields each image's CLS token.
        x = _mm(patches_ref[...], w_patch_ref[...]) + cls_pos_ref[...]     # [B*S, D]
        x = _ln(x, lnpre_g_ref[...], lnpre_b_ref[...])
        x = _block_compute(x, blk, heads=heads,
                           allowed=_block_diag_mask(B * S, S, causal=False))

        # CLS rows only; row-wise LN on them == ln_post on the full sequence.
        cls = jnp.concatenate([x[b * S:b * S + 1, :] for b in range(B)], axis=0)
        cls = _ln(cls, lnpost_g_ref[...], lnpost_b_ref[...])               # [B, D]
        img = _mm(cls.astype(jnp.bfloat16), w_out_ref[...])                # [B, E]

        # fused CLIP head: normalize, scale, cosine logits, exact softmax.
        img = img * lax.rsqrt(jnp.sum(img * img, axis=-1, keepdims=True) + 1e-12)
        logits = scale_ref[0, 0] * jnp.einsum(
            'be,ce->bc', img, txt_ref[...], preferred_element_type=jnp.float32)
        mx = jnp.max(logits, axis=-1, keepdims=True)
        e = jnp.exp(logits - mx)
        # exact division so output probabilities sum to 1 within f32 rounding
        o_ref[...] = (e / jnp.sum(e, axis=-1, keepdims=True)).astype(o_ref.dtype)

    return kernel


def _make_text_kernel(heads, C, L):
    nblk = len(_BLOCK_KEYS)

    def kernel(x_ref, eot_ref, *rest):
        blk = dict(zip(_BLOCK_KEYS, rest[:nblk]))
        lnf_g_ref, lnf_b_ref, w_out_ref, o_ref, xs_ref = rest[nblk:]

        x = x_ref[...]                                                     # [C*L, D]
        x = _block_compute(x, blk, heads=heads,
                           allowed=_block_diag_mask(C * L, L, causal=True))

        # EOT gather: flattened row indices arrive via SMEM; dynamic-slice
        # reads from a VMEM scratch replace the old host-side one-hot matmul.
        xs_ref[...] = x
        rows = [xs_ref[pl.ds(eot_ref[c], 1), :] for c in range(C)]
        feat = jnp.concatenate(rows, axis=0)                               # [C, D]
        feat = _ln(feat, lnf_g_ref[...], lnf_b_ref[...])  # == ln_final then gather
        feat = _mm(feat.astype(jnp.bfloat16), w_out_ref[...])              # [C, E]
        feat = feat * lax.rsqrt(jnp.sum(feat * feat, axis=-1, keepdims=True) + 1e-12)
        o_ref[...] = feat.astype(o_ref.dtype)

    return kernel


# ---------------------------- pallas_call wrappers ----------------------------

def _vmem():
    return pl.BlockSpec(memory_space=pltpu.MemorySpace.VMEM)


def _smem():
    return pl.BlockSpec(memory_space=pltpu.MemorySpace.SMEM)


def _prep_block(p):
    """Keep w_qkv packed [D,3D]; cast matmul weights to bf16 (halves HBM/VMEM
    traffic); biases / LN params stay f32."""
    bf = jnp.bfloat16
    return dict(
        ln1_g=p['ln1_g'].reshape(1, -1), ln1_b=p['ln1_b'].reshape(1, -1),
        w_qkv=p['w_qkv'].astype(bf), b_qkv=p['b_qkv'].reshape(1, -1),
        w_o=p['w_o'].astype(bf), b_o=p['b_o'].reshape(1, -1),
        ln2_g=p['ln2_g'].reshape(1, -1), ln2_b=p['ln2_b'].reshape(1, -1),
        w_fc=p['w_fc'].astype(bf), b_fc=p['b_fc'].reshape(1, -1),
        w_proj=p['w_proj'].astype(bf), b_proj=p['b_proj'].reshape(1, -1),
    )


def _cost(args, out_shape, T, D, mlp, heads):
    Dh = D // heads
    flops = (2 * T * D * 3 * D          # fused QKV
             + 4 * heads * T * T * Dh   # scores + PV
             + 2 * T * D * D            # out-projection
             + 4 * T * D * mlp)         # MLP
    transc = heads * T * T + T * mlp
    in_b = sum(int(a.size) * jnp.dtype(a.dtype).itemsize for a in args)
    out_b = math.prod(out_shape.shape) * jnp.dtype(out_shape.dtype).itemsize
    return pl.CostEstimate(flops=int(flops), transcendentals=int(transc),
                           bytes_accessed=int(in_b + out_b))


def encode_text(tokens, p):
    """All prompts in ONE grid-less pallas_call; rows flattened to [C*L, D]
    with a block-diagonal causal mask.  Returns L2-normalized [C, E]."""
    C, L = tokens.shape
    D, heads = p['width'], p['heads']
    E = p['w_out'].shape[1]
    mlp = p['block']['w_fc'].shape[1]

    # token embedding gather + positions kept in JAX (cheap, irregular gather)
    x = (jnp.take(p['tok_emb'], tokens, axis=0) + p['pos_emb'][None]) \
        .reshape(C * L, D).astype(jnp.float32)
    # CLIP: EOT token has the largest id; flattened row index per prompt
    eot_rows = (jnp.arange(C, dtype=jnp.int32) * L
                + jnp.argmax(tokens, axis=-1).astype(jnp.int32))

    blk = _prep_block(p['block'])
    args = ([x, eot_rows] + [blk[kk] for kk in _BLOCK_KEYS]
            + [p['ln_final_g'].reshape(1, -1), p['ln_final_b'].reshape(1, -1),
               p['w_out'].astype(jnp.bfloat16)])
    out_shape = jax.ShapeDtypeStruct((C, E), jnp.float32)
    return pl.pallas_call(
        _make_text_kernel(heads, C, L),
        out_shape=out_shape,
        in_specs=[_vmem(), _smem()] + [_vmem()] * (len(args) - 2),
        out_specs=_vmem(),
        scratch_shapes=[pltpu.VMEM((C * L, D), jnp.float32)],
        cost_estimate=_cost(args, out_shape, C * L, D, mlp, heads),
    )(*args)


def encode_image_and_classify(image, txt_feat, p, logit_scale):
    """All images in ONE grid-less pallas_call (rows flattened to [B*S, D],
    block-diagonal attention), with the CLIP head (normalize, scale, cosine
    logits, exact softmax) fused into the epilogue.  Returns probs [B, C]."""
    B, Cc, H, W = image.shape
    P, heads = p['patch_size'], p['heads']
    D = p['width']
    mlp = p['block']['w_fc'].shape[1]
    nP = (H // P) * (W // P)
    S = nP + 1
    CPP = Cc * P * P
    NC = txt_feat.shape[0]

    # unfold NCHW into non-overlapping PxP patches (== CLIP's stride-P conv
    # input); prepend a zero pseudo-patch per image for the CLS slot; flatten.
    patches = image.reshape(B, Cc, H // P, P, W // P, P)
    patches = patches.transpose(0, 2, 4, 1, 3, 5).reshape(B, nP, CPP)
    patches = jnp.concatenate([jnp.zeros((B, 1, CPP), patches.dtype), patches], axis=1)
    patches = patches.reshape(B * S, CPP).astype(jnp.bfloat16)
    cls_pos = p['pos_emb'].at[0].add(p['cls_emb'])                 # [S, D]
    cls_pos = jnp.tile(cls_pos, (B, 1)).astype(jnp.float32)        # [B*S, D]

    blk = _prep_block(p['block'])
    args = ([patches, p['w_patch'].astype(jnp.bfloat16), cls_pos,
             p['ln_pre_g'].reshape(1, -1), p['ln_pre_b'].reshape(1, -1)]
            + [blk[kk] for kk in _BLOCK_KEYS]
            + [p['ln_post_g'].reshape(1, -1), p['ln_post_b'].reshape(1, -1),
               p['w_out'].astype(jnp.bfloat16), txt_feat,
               logit_scale.reshape(1, 1).astype(jnp.float32)])
    out_shape = jax.ShapeDtypeStruct((B, NC), jnp.float32)
    return pl.pallas_call(
        _make_image_head_kernel(heads, B, S),
        out_shape=out_shape,
        in_specs=[_vmem()] * (len(args) - 1) + [_smem()],
        out_specs=_vmem(),
        cost_estimate=_cost(args, out_shape, B * S, D, mlp, heads),
    )(*args)


def continual_clip_forward(image, text_tokens, params):
    """= torch: probs = CLIP(image, text_tokens)[0].softmax(dim=-1)"""
    txt_feat = encode_text(text_tokens, params['text'])            # normalized [C, E]
    return encode_image_and_classify(image, txt_feat, params['visual'],
                                     params['logit_scale'])


# ---------------------------- deterministic params ----------------------------

def _init_block(key, D, mlp):
    ks = jax.random.split(key, 4)
    s = 0.02
    return dict(
        ln1_g=jnp.ones((D,), jnp.float32), ln1_b=jnp.zeros((D,), jnp.float32),
        w_qkv=s * jax.random.normal(ks[0], (D, 3 * D), jnp.float32),
        b_qkv=jnp.zeros((3 * D,), jnp.float32),
        w_o=s * jax.random.normal(ks[1], (D, D), jnp.float32),
        b_o=jnp.zeros((D,), jnp.float32),
        ln2_g=jnp.ones((D,), jnp.float32), ln2_b=jnp.zeros((D,), jnp.float32),
        w_fc=s * jax.random.normal(ks[2], (D, mlp), jnp.float32),
        b_fc=jnp.zeros((mlp,), jnp.float32),
        w_proj=s * jax.random.normal(ks[3], (mlp, D), jnp.float32),
        b_proj=jnp.zeros((D,), jnp.float32),
    )


def init_params(key, *, patch=8, width=32, heads=4, embed=16, img_ch=3,
                vocab=32, ctx_len=8, img_hw=16):
    kv, kt, kb1, kb2 = jax.random.split(key, 4)
    kvs = jax.random.split(kv, 4)
    kts = jax.random.split(kt, 3)
    s = 0.02
    n_patches = (img_hw // patch) ** 2
    visual = dict(
        patch_size=patch, width=width, heads=heads,
        w_patch=s * jax.random.normal(kvs[0], (img_ch * patch * patch, width), jnp.float32),
        cls_emb=s * jax.random.normal(kvs[1], (width,), jnp.float32),
        pos_emb=s * jax.random.normal(kvs[2], (n_patches + 1, width), jnp.float32),
        ln_pre_g=jnp.ones((width,), jnp.float32), ln_pre_b=jnp.zeros((width,), jnp.float32),
        ln_post_g=jnp.ones((width,), jnp.float32), ln_post_b=jnp.zeros((width,), jnp.float32),
        block=_init_block(kb1, width, 4 * width),
        w_out=s * jax.random.normal(kvs[3], (width, embed), jnp.float32),
    )
    text = dict(
        width=width, heads=heads,
        tok_emb=s * jax.random.normal(kts[0], (vocab, width), jnp.float32),
        pos_emb=s * jax.random.normal(kts[1], (ctx_len, width), jnp.float32),
        ln_final_g=jnp.ones((width,), jnp.float32), ln_final_b=jnp.zeros((width,), jnp.float32),
        block=_init_block(kb2, width, 4 * width),
        w_out=s * jax.random.normal(kts[2], (width, embed), jnp.float32),
    )
    logit_scale = jnp.exp(jnp.array(jnp.log(1.0 / 0.07), jnp.float32))
    return dict(visual=visual, text=text, logit_scale=logit_scale)


# ---------------------------- main ----------------------------

if __name__ == "__main__":
    key = jax.random.PRNGKey(0)
    k_par, k_img, k_tok = jax.random.split(key, 3)

    B, C_IMG, HW = 2, 3, 16
    NUM_CLASSES, CTX, VOCAB = 4, 8, 32

    params = init_params(k_par, patch=8, width=32, heads=4, embed=16,
                         img_ch=C_IMG, vocab=VOCAB, ctx_len=CTX, img_hw=HW)

    image = jax.random.normal(k_img, (B, C_IMG, HW, HW), jnp.float32)   # NCHW

    # synthetic "tokenized prompts": SOT=1, random middle, EOT=vocab-1 last
    mid = jax.random.randint(k_tok, (NUM_CLASSES, CTX - 2), 2, VOCAB - 1).astype(jnp.int32)
    text_tokens = jnp.concatenate(
        [jnp.full((NUM_CLASSES, 1), 1, jnp.int32),
         mid,
         jnp.full((NUM_CLASSES, 1), VOCAB - 1, jnp.int32)], axis=1)

    probs = continual_clip_forward(image, text_tokens, params)
    probs = jax.block_until_ready(probs)

    assert probs.shape == (B, NUM_CLASSES)
    assert bool(jnp.all(jnp.isfinite(probs)))
    assert bool(jnp.allclose(jnp.sum(probs, axis=-1), 1.0, atol=1e-5))
    print("KERNEL_OK")
</pallas_src>

<mosaic_0001>
module attributes {stable_mosaic.version = 11 : i64} {
  func.func @kernel(%arg0: memref<32x32xf32, #tpu.memory_space<vmem>>, %arg1: memref<4xi32, #tpu.memory_space<smem>>, %arg2: memref<1x32xf32, #tpu.memory_space<vmem>>, %arg3: memref<1x32xf32, #tpu.memory_space<vmem>>, %arg4: memref<32x96xbf16, #tpu.memory_space<vmem>>, %arg5: memref<1x96xf32, #tpu.memory_space<vmem>>, %arg6: memref<32x32xbf16, #tpu.memory_space<vmem>>, %arg7: memref<1x32xf32, #tpu.memory_space<vmem>>, %arg8: memref<1x32xf32, #tpu.memory_space<vmem>>, %arg9: memref<1x32xf32, #tpu.memory_space<vmem>>, %arg10: memref<32x128xbf16, #tpu.memory_space<vmem>>, %arg11: memref<1x128xf32, #tpu.memory_space<vmem>>, %arg12: memref<128x32xbf16, #tpu.memory_space<vmem>>, %arg13: memref<1x32xf32, #tpu.memory_space<vmem>>, %arg14: memref<1x32xf32, #tpu.memory_space<vmem>>, %arg15: memref<1x32xf32, #tpu.memory_space<vmem>>, %arg16: memref<32x16xbf16, #tpu.memory_space<vmem>>, %arg17: memref<4x16xf32, #tpu.memory_space<vmem>>, %arg18: memref<32x32xf32, #tpu.memory_space<vmem>>) attributes {dimension_semantics = [], scalar_prefetch = 0 : i64, scratch_operands = 1 : i64, tpu.core_type = #tpu.core_type<tc>} {
    %c0 = arith.constant 0 : index
    %c0_0 = arith.constant 0 : index
    %0 = vector.load %arg0[%c0, %c0_0] : memref<32x32xf32, #tpu.memory_space<vmem>>, vector<32x32xf32>
    %1 = tpu.iota {dimensions = array<i32: 0>} : vector<32x32xi32>
    %2 = tpu.iota {dimensions = array<i32: 1>} : vector<32x32xi32>
    %c0_i32 = arith.constant 0 : i32
    %3 = vector.broadcast %c0_i32 : i32 to vector<32x32xi32>
    %4 = arith.cmpi sge, %1, %3 : vector<32x32xi32>
    %c8_i32 = arith.constant 8 : i32
    %5 = vector.broadcast %c8_i32 : i32 to vector<32x32xi32>
    %6 = arith.cmpi slt, %1, %5 : vector<32x32xi32>
    %7 = arith.andi %4, %6 : vector<32x32xi1>
    %c0_i32_1 = arith.constant 0 : i32
    %8 = vector.broadcast %c0_i32_1 : i32 to vector<32x32xi32>
    %9 = arith.cmpi sge, %2, %8 : vector<32x32xi32>
    %c8_i32_2 = arith.constant 8 : i32
    %10 = vector.broadcast %c8_i32_2 : i32 to vector<32x32xi32>
    %11 = arith.cmpi slt, %2, %10 : vector<32x32xi32>
    %12 = arith.andi %9, %11 : vector<32x32xi1>
    %13 = arith.andi %7, %12 : vector<32x32xi1>
    %c8_i32_3 = arith.constant 8 : i32
    %14 = vector.broadcast %c8_i32_3 : i32 to vector<32x32xi32>
    %15 = arith.cmpi sge, %1, %14 : vector<32x32xi32>
    %c16_i32 = arith.constant 16 : i32
    %16 = vector.broadcast %c16_i32 : i32 to vector<32x32xi32>
    %17 = arith.cmpi slt, %1, %16 : vector<32x32xi32>
    %18 = arith.andi %15, %17 : vector<32x32xi1>
    %c8_i32_4 = arith.constant 8 : i32
    %19 = vector.broadcast %c8_i32_4 : i32 to vector<32x32xi32>
    %20 = arith.cmpi sge, %2, %19 : vector<32x32xi32>
    %c16_i32_5 = arith.constant 16 : i32
    %21 = vector.broadcast %c16_i32_5 : i32 to vector<32x32xi32>
    %22 = arith.cmpi slt, %2, %21 : vector<32x32xi32>
    %23 = arith.andi %20, %22 : vector<32x32xi1>
    %24 = arith.andi %18, %23 : vector<32x32xi1>
    %25 = arith.ori %13, %24 : vector<32x32xi1>
    %c16_i32_6 = arith.constant 16 : i32
    %26 = vector.broadcast %c16_i32_6 : i32 to vector<32x32xi32>
    %27 = arith.cmpi sge, %1, %26 : vector<32x32xi32>
    %c24_i32 = arith.constant 24 : i32
    %28 = vector.broadcast %c24_i32 : i32 to vector<32x32xi32>
    %29 = arith.cmpi slt, %1, %28 : vector<32x32xi32>
    %30 = arith.andi %27, %29 : vector<32x32xi1>
    %c16_i32_7 = arith.constant 16 : i32
    %31 = vector.broadcast %c16_i32_7 : i32 to vector<32x32xi32>
    %32 = arith.cmpi sge, %2, %31 : vector<32x32xi32>
    %c24_i32_8 = arith.constant 24 : i32
    %33 = vector.broadcast %c24_i32_8 : i32 to vector<32x32xi32>
    %34 = arith.cmpi slt, %2, %33 : vector<32x32xi32>
    %35 = arith.andi %32, %34 : vector<32x32xi1>
    %36 = arith.andi %30, %35 : vector<32x32xi1>
    %37 = arith.ori %25, %36 : vector<32x32xi1>
    %c24_i32_9 = arith.constant 24 : i32
    %38 = vector.broadcast %c24_i32_9 : i32 to vector<32x32xi32>
    %39 = arith.cmpi sge, %1, %38 : vector<32x32xi32>
    %c32_i32 = arith.constant 32 : i32
    %40 = vector.broadcast %c32_i32 : i32 to vector<32x32xi32>
    %41 = arith.cmpi slt, %1, %40 : vector<32x32xi32>
    %42 = arith.andi %39, %41 : vector<32x32xi1>
    %c24_i32_10 = arith.constant 24 : i32
    %43 = vector.broadcast %c24_i32_10 : i32 to vector<32x32xi32>
    %44 = arith.cmpi sge, %2, %43 : vector<32x32xi32>
    %c32_i32_11 = arith.constant 32 : i32
    %45 = vector.broadcast %c32_i32_11 : i32 to vector<32x32xi32>
    %46 = arith.cmpi slt, %2, %45 : vector<32x32xi32>
    %47 = arith.andi %44, %46 : vector<32x32xi1>
    %48 = arith.andi %42, %47 : vector<32x32xi1>
    %49 = arith.ori %37, %48 : vector<32x32xi1>
    %50 = arith.cmpi sle, %2, %1 : vector<32x32xi32>
    %51 = arith.andi %49, %50 : vector<32x32xi1>
    %c0_12 = arith.constant 0 : index
    %c0_13 = arith.constant 0 : index
    %52 = vector.load %arg2[%c0_12, %c0_13] : memref<1x32xf32, #tpu.memory_space<vmem>>, vector<1x32xf32>
    %c0_14 = arith.constant 0 : index
    %c0_15 = arith.constant 0 : index
    %53 = vector.load %arg3[%c0_14, %c0_15] : memref<1x32xf32, #tpu.memory_space<vmem>>, vector<1x32xf32>
    %cst = arith.constant dense<0.000000e+00> : vector<32xf32>
    %54 = vector.multi_reduction <add>, %0, %cst [1] : vector<32x32xf32> to vector<32xf32>
    %55 = vector.shape_cast %54 : vector<32xf32> to vector<32x1xf32>
    %cst_16 = arith.constant 3.200000e+01 : f32
    %56 = vector.broadcast %cst_16 : f32 to vector<32x1xf32>
    %57 = arith.divf %55, %56 : vector<32x1xf32>
    %58 = vector.broadcast %57 : vector<32x1xf32> to vector<32x32xf32>
    %59 = arith.subf %0, %58 : vector<32x32xf32>
    %60 = arith.mulf %59, %59 : vector<32x32xf32>
    %cst_17 = arith.constant dense<0.000000e+00> : vector<32xf32>
    %61 = vector.multi_reduction <add>, %60, %cst_17 [1] : vector<32x32xf32> to vector<32xf32>
    %62 = vector.shape_cast %61 : vector<32xf32> to vector<32x1xf32>
    %cst_18 = arith.constant 3.200000e+01 : f32
    %63 = vector.broadcast %cst_18 : f32 to vector<32x1xf32>
    %64 = arith.divf %62, %63 : vector<32x1xf32>
    %cst_19 = arith.constant 9.99999974E-6 : f32
    %65 = vector.broadcast %cst_19 : f32 to vector<32x1xf32>
    %66 = arith.addf %64, %65 : vector<32x1xf32>
    %67 = math.rsqrt %66 : vector<32x1xf32>
    %68 = vector.broadcast %67 : vector<32x1xf32> to vector<32x32xf32>
    %69 = arith.mulf %59, %68 : vector<32x32xf32>
    %70 = vector.broadcast %52 : vector<1x32xf32> to vector<32x32xf32>
    %71 = arith.mulf %69, %70 : vector<32x32xf32>
    %72 = vector.broadcast %53 : vector<1x32xf32> to vector<32x32xf32>
    %73 = arith.addf %71, %72 : vector<32x32xf32>
    %74 = arith.truncf %73 : vector<32x32xf32> to vector<32x32xbf16>
    %c0_20 = arith.constant 0 : index
    %c0_21 = arith.constant 0 : index
    %75 = vector.load %arg4[%c0_20, %c0_21] : memref<32x96xbf16, #tpu.memory_space<vmem>>, vector<32x96xbf16>
    %cst_22 = arith.constant dense<0.000000e+00> : vector<32x96xf32>
    %76 = tpu.matmul %74, %75, %cst_22 {dimension_numbers = #tpu.dot_dimension_numbers<[1], [0], [0], [1], [0, 0, 1, 1], [], []>} : vector<32x32xbf16>, vector<32x96xbf16>, vector<32x96xf32> -> vector<32x96xf32>
    %c0_23 = arith.constant 0 : index
    %c0_24 = arith.constant 0 : index
    %77 = vector.load %arg5[%c0_23, %c0_24] : memref<1x96xf32, #tpu.memory_space<vmem>>, vector<1x96xf32>
    %78 = vector.broadcast %77 : vector<1x96xf32> to vector<32x96xf32>
    %79 = arith.addf %76, %78 : vector<32x96xf32>
    %80 = arith.truncf %79 : vector<32x96xf32> to vector<32x96xbf16>
    %81 = vector.extract_strided_slice %80 {offsets = [0, 0], sizes = [32, 8], strides = [1, 1]} : vector<32x96xbf16> to vector<32x8xbf16>
    %82 = vector.extract_strided_slice %80 {offsets = [0, 8], sizes = [32, 8], strides = [1, 1]} : vector<32x96xbf16> to vector<32x8xbf16>
    %83 = vector.extract_strided_slice %80 {offsets = [0, 16], sizes = [32, 8], strides = [1, 1]} : vector<32x96xbf16> to vector<32x8xbf16>
    %84 = vector.extract_strided_slice %80 {offsets = [0, 24], sizes = [32, 8], strides = [1, 1]} : vector<32x96xbf16> to vector<32x8xbf16>
    %85 = vector.shape_cast %81 : vector<32x8xbf16> to vector<1x32x8xbf16>
    %86 = vector.shape_cast %82 : vector<32x8xbf16> to vector<1x32x8xbf16>
    %87 = vector.shape_cast %83 : vector<32x8xbf16> to vector<1x32x8xbf16>
    %88 = vector.shape_cast %84 : vector<32x8xbf16> to vector<1x32x8xbf16>
    %89 = tpu.concatenate %85, %86, %87, %88 in 0 : vector<1x32x8xbf16>, vector<1x32x8xbf16>, vector<1x32x8xbf16>, vector<1x32x8xbf16> -> vector<4x32x8xbf16>
    %90 = vector.extract_strided_slice %80 {offsets = [0, 32], sizes = [32, 8], strides = [1, 1]} : vector<32x96xbf16> to vector<32x8xbf16>
    %91 = vector.extract_strided_slice %80 {offsets = [0, 40], sizes = [32, 8], strides = [1, 1]} : vector<32x96xbf16> to vector<32x8xbf16>
    %92 = vector.extract_strided_slice %80 {offsets = [0, 48], sizes = [32, 8], strides = [1, 1]} : vector<32x96xbf16> to vector<32x8xbf16>
    %93 = vector.extract_strided_slice %80 {offsets = [0, 56], sizes = [32, 8], strides = [1, 1]} : vector<32x96xbf16> to vector<32x8xbf16>
    %94 = vector.shape_cast %90 : vector<32x8xbf16> to vector<1x32x8xbf16>
    %95 = vector.shape_cast %91 : vector<32x8xbf16> to vector<1x32x8xbf16>
    %96 = vector.shape_cast %92 : vector<32x8xbf16> to vector<1x32x8xbf16>
    %97 = vector.shape_cast %93 : vector<32x8xbf16> to vector<1x32x8xbf16>
    %98 = tpu.concatenate %94, %95, %96, %97 in 0 : vector<1x32x8xbf16>, vector<1x32x8xbf16>, vector<1x32x8xbf16>, vector<1x32x8xbf16> -> vector<4x32x8xbf16>
    %99 = vector.extract_strided_slice %80 {offsets = [0, 64], sizes = [32, 8], strides = [1, 1]} : vector<32x96xbf16> to vector<32x8xbf16>
    %100 = vector.extract_strided_slice %80 {offsets = [0, 72], sizes = [32, 8], strides = [1, 1]} : vector<32x96xbf16> to vector<32x8xbf16>
    %101 = vector.extract_strided_slice %80 {offsets = [0, 80], sizes = [32, 8], strides = [1, 1]} : vector<32x96xbf16> to vector<32x8xbf16>
    %102 = vector.extract_strided_slice %80 {offsets = [0, 88], sizes = [32, 8], strides = [1, 1]} : vector<32x96xbf16> to vector<32x8xbf16>
    %103 = vector.shape_cast %99 : vector<32x8xbf16> to vector<1x32x8xbf16>
    %104 = vector.shape_cast %100 : vector<32x8xbf16> to vector<1x32x8xbf16>
    %105 = vector.shape_cast %101 : vector<32x8xbf16> to vector<1x32x8xbf16>
    %106 = vector.shape_cast %102 : vector<32x8xbf16> to vector<1x32x8xbf16>
    %107 = tpu.concatenate %103, %104, %105, %106 in 0 : vector<1x32x8xbf16>, vector<1x32x8xbf16>, vector<1x32x8xbf16>, vector<1x32x8xbf16> -> vector<4x32x8xbf16>
    "tpu.trace_start"() <{level = 10 : i32, message = "hsd,htd->hst"}> : () -> ()
    %cst_25 = arith.constant dense<0.000000e+00> : vector<4x32x32xf32>
    %108 = tpu.matmul %89, %98, %cst_25 {dimension_numbers = #tpu.dot_dimension_numbers<[2], [2], [1], [1], [0, 0, 0, 1, 1, 1], [0], [0]>} : vector<4x32x8xbf16>, vector<4x32x8xbf16>, vector<4x32x32xf32> -> vector<4x32x32xf32>
    "tpu.trace_stop"() : () -> ()
    %cst_26 = arith.constant 0.353553385 : f32
    %109 = vector.broadcast %cst_26 : f32 to vector<4x32x32xf32>
    %110 = arith.mulf %108, %109 : vector<4x32x32xf32>
    %111 = vector.shape_cast %51 : vector<32x32xi1> to vector<1x32x32xi1>
    %cst_27 = arith.constant 0xFF800000 : f32
    %112 = vector.shape_cast %111 : vector<1x32x32xi1> to vector<1x32x32xi1>
    %113 = vector.broadcast %112 : vector<1x32x32xi1> to vector<4x32x32xi1>
    %114 = vector.broadcast %cst_27 : f32 to vector<4x32x32xf32>
    %115 = arith.select %113, %110, %114 : vector<4x32x32xi1>, vector<4x32x32xf32>
    %cst_28 = arith.constant dense<0xFF800000> : vector<4x32xf32>
    %116 = vector.multi_reduction <maximumf>, %115, %cst_28 [2] : vector<4x32x32xf32> to vector<4x32xf32>
    %117 = vector.shape_cast %116 : vector<4x32xf32> to vector<4x32x1xf32>
    %118 = vector.broadcast %117 : vector<4x32x1xf32> to vector<4x32x32xf32>
    %119 = arith.subf %115, %118 : vector<4x32x32xf32>
    %120 = math.exp %119 : vector<4x32x32xf32>
    %cst_29 = arith.constant dense<0.000000e+00> : vector<4x32xf32>
    %121 = vector.multi_reduction <add>, %120, %cst_29 [2] : vector<4x32x32xf32> to vector<4x32xf32>
    %122 = vector.shape_cast %121 : vector<4x32xf32> to vector<4x32x1xf32>
    %123 = tpu.reciprocal %122 {approx = true} : vector<4x32x1xf32> -> vector<4x32x1xf32>
    %124 = vector.broadcast %123 : vector<4x32x1xf32> to vector<4x32x32xf32>
    %125 = arith.mulf %120, %124 : vector<4x32x32xf32>
    %126 = arith.truncf %125 : vector<4x32x32xf32> to vector<4x32x32xbf16>
    "tpu.trace_start"() <{level = 10 : i32, message = "hst,htd->hsd"}> : () -> ()
    %cst_30 = arith.constant dense<0.000000e+00> : vector<4x32x8xf32>
    %127 = tpu.matmul %126, %107, %cst_30 {dimension_numbers = #tpu.dot_dimension_numbers<[2], [1], [1], [2], [0, 0, 0, 1, 1, 2], [0], [0]>} : vector<4x32x32xbf16>, vector<4x32x8xbf16>, vector<4x32x8xf32> -> vector<4x32x8xf32>
    "tpu.trace_stop"() : () -> ()
    %128 = vector.extract_strided_slice %127 {offsets = [0, 0, 0], sizes = [1, 32, 8], strides = [1, 1, 1]} : vector<4x32x8xf32> to vector<1x32x8xf32>
    %129 = vector.shape_cast %128 : vector<1x32x8xf32> to vector<32x8xf32>
    %130 = vector.extract_strided_slice %127 {offsets = [1, 0, 0], sizes = [1, 32, 8], strides = [1, 1, 1]} : vector<4x32x8xf32> to vector<1x32x8xf32>
    %131 = vector.shape_cast %130 : vector<1x32x8xf32> to vector<32x8xf32>
    %132 = vector.extract_strided_slice %127 {offsets = [2, 0, 0], sizes = [1, 32, 8], strides = [1, 1, 1]} : vector<4x32x8xf32> to vector<1x32x8xf32>
    %133 = vector.shape_cast %132 : vector<1x32x8xf32> to vector<32x8xf32>
    %134 = vector.extract_strided_slice %127 {offsets = [3, 0, 0], sizes = [1, 32, 8], strides = [1, 1, 1]} : vector<4x32x8xf32> to vector<1x32x8xf32>
    %135 = vector.shape_cast %134 : vector<1x32x8xf32> to vector<32x8xf32>
    %136 = tpu.concatenate %129, %131, %133, %135 in 1 : vector<32x8xf32>, vector<32x8xf32>, vector<32x8xf32>, vector<32x8xf32> -> vector<32x32xf32>
    %137 = arith.truncf %136 : vector<32x32xf32> to vector<32x32xbf16>
    %c0_31 = arith.constant 0 : index
    %c0_32 = arith.constant 0 : index
    %138 = vector.load %arg6[%c0_31, %c0_32] : memref<32x32xbf16, #tpu.memory_space<vmem>>, vector<32x32xbf16>
    %cst_33 = arith.constant dense<0.000000e+00> : vector<32x32xf32>
    %139 = tpu.matmul %137, %138, %cst_33 {dimension_numbers = #tpu.dot_dimension_numbers<[1], [0], [0], [1], [0, 0, 1, 1], [], []>} : vector<32x32xbf16>, vector<32x32xbf16>, vector<32x32xf32> -> vector<32x32xf32>
    %140 = arith.addf %0, %139 : vector<32x32xf32>
    %c0_34 = arith.constant 0 : index
    %c0_35 = arith.constant 0 : index
    %141 = vector.load %arg7[%c0_34, %c0_35] : memref<1x32xf32, #tpu.memory_space<vmem>>, vector<1x32xf32>
    %142 = vector.broadcast %141 : vector<1x32xf32> to vector<32x32xf32>
    %143 = arith.addf %140, %142 : vector<32x32xf32>
    %c0_36 = arith.constant 0 : index
    %c0_37 = arith.constant 0 : index
    %144 = vector.load %arg8[%c0_36, %c0_37] : memref<1x32xf32, #tpu.memory_space<vmem>>, vector<1x32xf32>
    %c0_38 = arith.constant 0 : index
    %c0_39 = arith.constant 0 : index
    %145 = vector.load %arg9[%c0_38, %c0_39] : memref<1x32xf32, #tpu.memory_space<vmem>>, vector<1x32xf32>
    %cst_40 = arith.constant dense<0.000000e+00> : vector<32xf32>
    %146 = vector.multi_reduction <add>, %143, %cst_40 [1] : vector<32x32xf32> to vector<32xf32>
    %147 = vector.shape_cast %146 : vector<32xf32> to vector<32x1xf32>
    %cst_41 = arith.constant 3.200000e+01 : f32
    %148 = vector.broadcast %cst_41 : f32 to vector<32x1xf32>
    %149 = arith.divf %147, %148 : vector<32x1xf32>
    %150 = vector.broadcast %149 : vector<32x1xf32> to vector<32x32xf32>
    %151 = arith.subf %143, %150 : vector<32x32xf32>
    %152 = arith.mulf %151, %151 : vector<32x32xf32>
    %cst_42 = arith.constant dense<0.000000e+00> : vector<32xf32>
    %153 = vector.multi_reduction <add>, %152, %cst_42 [1] : vector<32x32xf32> to vector<32xf32>
    %154 = vector.shape_cast %153 : vector<32xf32> to vector<32x1xf32>
    %cst_43 = arith.constant 3.200000e+01 : f32
    %155 = vector.broadcast %cst_43 : f32 to vector<32x1xf32>
    %156 = arith.divf %154, %155 : vector<32x1xf32>
    %cst_44 = arith.constant 9.99999974E-6 : f32
    %157 = vector.broadcast %cst_44 : f32 to vector<32x1xf32>
    %158 = arith.addf %156, %157 : vector<32x1xf32>
    %159 = math.rsqrt %158 : vector<32x1xf32>
    %160 = vector.broadcast %159 : vector<32x1xf32> to vector<32x32xf32>
    %161 = arith.mulf %151, %160 : vector<32x32xf32>
    %162 = vector.broadcast %144 : vector<1x32xf32> to vector<32x32xf32>
    %163 = arith.mulf %161, %162 : vector<32x32xf32>
    %164 = vector.broadcast %145 : vector<1x32xf32> to vector<32x32xf32>
    %165 = arith.addf %163, %164 : vector<32x32xf32>
    %166 = arith.truncf %165 : vector<32x32xf32> to vector<32x32xbf16>
    %c0_45 = arith.constant 0 : index
    %c0_46 = arith.constant 0 : index
    %167 = vector.load %arg10[%c0_45, %c0_46] : memref<32x128xbf16, #tpu.memory_space<vmem>>, vector<32x128xbf16>
    %cst_47 = arith.constant dense<0.000000e+00> : vector<32x128xf32>
    %168 = tpu.matmul %166, %167, %cst_47 {dimension_numbers = #tpu.dot_dimension_numbers<[1], [0], [0], [1], [0, 0, 1, 1], [], []>} : vector<32x32xbf16>, vector<32x128xbf16>, vector<32x128xf32> -> vector<32x128xf32>
    %c0_48 = arith.constant 0 : index
    %c0_49 = arith.constant 0 : index
    %169 = vector.load %arg11[%c0_48, %c0_49] : memref<1x128xf32, #tpu.memory_space<vmem>>, vector<1x128xf32>
    %170 = vector.broadcast %169 : vector<1x128xf32> to vector<32x128xf32>
    %171 = arith.addf %168, %170 : vector<32x128xf32>
    %cst_50 = arith.constant 1.702000e+00 : f32
    %172 = vector.broadcast %cst_50 : f32 to vector<32x128xf32>
    %173 = arith.mulf %172, %171 : vector<32x128xf32>
    %174 = arith.negf %173 : vector<32x128xf32>
    %175 = math.exp %174 : vector<32x128xf32>
    %cst_51 = arith.constant 1.000000e+00 : f32
    %176 = vector.broadcast %cst_51 : f32 to vector<32x128xf32>
    %177 = arith.addf %176, %175 : vector<32x128xf32>
    %178 = arith.divf %176, %177 : vector<32x128xf32>
    %179 = arith.mulf %171, %178 : vector<32x128xf32>
    %180 = arith.truncf %179 : vector<32x128xf32> to vector<32x128xbf16>
    %c0_52 = arith.constant 0 : index
    %c0_53 = arith.constant 0 : index
    %181 = vector.load %arg12[%c0_52, %c0_53] : memref<128x32xbf16, #tpu.memory_space<vmem>>, vector<128x32xbf16>
    %cst_54 = arith.constant dense<0.000000e+00> : vector<32x32xf32>
    %182 = tpu.matmul %180, %181, %cst_54 {dimension_numbers = #tpu.dot_dimension_numbers<[1], [0], [0], [1], [0, 0, 1, 1], [], []>} : vector<32x128xbf16>, vector<128x32xbf16>, vector<32x32xf32> -> vector<32x32xf32>
    %183 = arith.addf %143, %182 : vector<32x32xf32>
    %c0_55 = arith.constant 0 : index
    %c0_56 = arith.constant 0 : index
    %184 = vector.load %arg13[%c0_55, %c0_56] : memref<1x32xf32, #tpu.memory_space<vmem>>, vector<1x32xf32>
    %185 = vector.broadcast %184 : vector<1x32xf32> to vector<32x32xf32>
    %186 = arith.addf %183, %185 : vector<32x32xf32>
    %c0_57 = arith.constant 0 : index
    %c0_58 = arith.constant 0 : index
    %187 = vector.load %arg18[%c0_57, %c0_58] : memref<32x32xf32, #tpu.memory_space<vmem>>, vector<32x32xf32>
    tpu.vector_store %arg18[%c0_57, %c0_58], %186 {strides = array<i32>} : memref<32x32xf32, #tpu.memory_space<vmem>>, vector<32x32xf32>,
    %c0_59 = arith.constant 0 : index
    %188 = memref.load %arg1[%c0_59] : memref<4xi32, #tpu.memory_space<smem>>
    %189 = arith.index_cast %188 : i32 to index
    %c0_60 = arith.constant 0 : index
    %190 = vector.load %arg18[%189, %c0_60] : memref<32x32xf32, #tpu.memory_space<vmem>>, vector<1x32xf32>
    %c1 = arith.constant 1 : index
    %191 = memref.load %arg1[%c1] : memref<4xi32, #tpu.memory_space<smem>>
    %192 = arith.index_cast %191 : i32 to index
    %c0_61 = arith.constant 0 : index
    %193 = vector.load %arg18[%192, %c0_61] : memref<32x32xf32, #tpu.memory_space<vmem>>, vector<1x32xf32>
    %c2 = arith.constant 2 : index
    %194 = memref.load %arg1[%c2] : memref<4xi32, #tpu.memory_space<smem>>
    %195 = arith.index_cast %194 : i32 to index
    %c0_62 = arith.constant 0 : index
    %196 = vector.load %arg18[%195, %c0_62] : memref<32x32xf32, #tpu.memory_space<vmem>>, vector<1x32xf32>
    %c3 = arith.constant 3 : index
    %197 = memref.load %arg1[%c3] : memref<4xi32, #tpu.memory_space<smem>>
    %198 = arith.index_cast %197 : i32 to index
    %c0_63 = arith.constant 0 : index
    %199 = vector.load %arg18[%198, %c0_63] : memref<32x32xf32, #tpu.memory_space<vmem>>, vector<1x32xf32>
    %200 = tpu.concatenate %190, %193, %196, %199 in 0 : vector<1x32xf32>, vector<1x32xf32>, vector<1x32xf32>, vector<1x32xf32> -> vector<4x32xf32>
    %c0_64 = arith.constant 0 : index
    %c0_65 = arith.constant 0 : index
    %201 = vector.load %arg14[%c0_64, %c0_65] : memref<1x32xf32, #tpu.memory_space<vmem>>, vector<1x32xf32>
    %c0_66 = arith.constant 0 : index
    %c0_67 = arith.constant 0 : index
    %202 = vector.load %arg15[%c0_66, %c0_67] : memref<1x32xf32, #tpu.memory_space<vmem>>, vector<1x32xf32>
    %cst_68 = arith.constant dense<0.000000e+00> : vector<4xf32>
    %203 = vector.multi_reduction <add>, %200, %cst_68 [1] : vector<4x32xf32> to vector<4xf32>
    %204 = vector.shape_cast %203 : vector<4xf32> to vector<4x1xf32>
    %cst_69 = arith.constant 3.200000e+01 : f32
    %205 = vector.broadcast %cst_69 : f32 to vector<4x1xf32>
    %206 = arith.divf %204, %205 : vector<4x1xf32>
    %207 = vector.broadcast %206 : vector<4x1xf32> to vector<4x32xf32>
    %208 = arith.subf %200, %207 : vector<4x32xf32>
    %209 = arith.mulf %208, %208 : vector<4x32xf32>
    %cst_70 = arith.constant dense<0.000000e+00> : vector<4xf32>
    %210 = vector.multi_reduction <add>, %209, %cst_70 [1] : vector<4x32xf32> to vector<4xf32>
    %211 = vector.shape_cast %210 : vector<4xf32> to vector<4x1xf32>
    %cst_71 = arith.constant 3.200000e+01 : f32
    %212 = vector.broadcast %cst_71 : f32 to vector<4x1xf32>
    %213 = arith.divf %211, %212 : vector<4x1xf32>
    %cst_72 = arith.constant 9.99999974E-6 : f32
    %214 = vector.broadcast %cst_72 : f32 to vector<4x1xf32>
    %215 = arith.addf %213, %214 : vector<4x1xf32>
    %216 = math.rsqrt %215 : vector<4x1xf32>
    %217 = vector.broadcast %216 : vector<4x1xf32> to vector<4x32xf32>
    %218 = arith.mulf %208, %217 : vector<4x32xf32>
    %219 = vector.broadcast %201 : vector<1x32xf32> to vector<4x32xf32>
    %220 = arith.mulf %218, %219 : vector<4x32xf32>
    %221 = vector.broadcast %202 : vector<1x32xf32> to vector<4x32xf32>
    %222 = arith.addf %220, %221 : vector<4x32xf32>
    %223 = arith.truncf %222 : vector<4x32xf32> to vector<4x32xbf16>
    %c0_73 = arith.constant 0 : index
    %c0_74 = arith.constant 0 : index
    %224 = vector.load %arg16[%c0_73, %c0_74] : memref<32x16xbf16, #tpu.memory_space<vmem>>, vector<32x16xbf16>
    %cst_75 = arith.constant dense<0.000000e+00> : vector<4x16xf32>
    %225 = tpu.matmul %223, %224, %cst_75 {dimension_numbers = #tpu.dot_dimension_numbers<[1], [0], [0], [1], [0, 0, 1, 1], [], []>} : vector<4x32xbf16>, vector<32x16xbf16>, vector<4x16xf32> -> vector<4x16xf32>
    %226 = arith.mulf %225, %225 : vector<4x16xf32>
    %cst_76 = arith.constant dense<0.000000e+00> : vector<4xf32>
    %227 = vector.multi_reduction <add>, %226, %cst_76 [1] : vector<4x16xf32> to vector<4xf32>
    %228 = vector.shape_cast %227 : vector<4xf32> to vector<4x1xf32>
    %cst_77 = arith.constant 9.99999996E-13 : f32
    %229 = vector.broadcast %cst_77 : f32 to vector<4x1xf32>
    %230 = arith.addf %228, %229 : vector<4x1xf32>
    %231 = math.rsqrt %230 : vector<4x1xf32>
    %232 = vector.broadcast %231 : vector<4x1xf32> to vector<4x16xf32>
    %233 = arith.mulf %225, %232 : vector<4x16xf32>
    %c0_78 = arith.constant 0 : index
    %c0_79 = arith.constant 0 : index
    %234 = vector.load %arg17[%c0_78, %c0_79] : memref<4x16xf32, #tpu.memory_space<vmem>>, vector<4x16xf32>
    tpu.vector_store %arg17[%c0_78, %c0_79], %233 {strides = array<i32>} : memref<4x16xf32, #tpu.memory_space<vmem>>, vector<4x16xf32>,
    return
  }
}

</mosaic_0001>

<bundles_post_ra>
// kernel: tpu_custom_call.1
= control target key start
LH: loop header
LB: loop body
LE: loop exit
PB: predicated region body
PF: predicated region fallthrough
CT: control target
= control target key end

     0   :  { %s2696_s0 = inlined_call_operand.vmem [shape: f32[32,32], index: 0, kind: input, shape index: {}]   ;;  %s2697_s1 = inlined_call_operand.vmem [shape: s32[4], index: 1, kind: input, shape index: {}]   ;;  %s2698_s2 = inlined_call_operand.vmem [shape: f32[1,32], index: 2, kind: input, shape index: {}]   ;;  %s2699_s3 = inlined_call_operand.vmem [shape: f32[1,32], index: 3, kind: input, shape index: {}]   ;;  %s2700_s4 = inlined_call_operand.vmem [shape: bf16[32,96], index: 4, kind: input, shape index: {}]   ;;  %s2701_s5 = inlined_call_operand.vmem [shape: f32[1,96], index: 5, kind: input, shape index: {}]   ;;  %s2702_s6 = inlined_call_operand.vmem [shape: bf16[32,32], index: 6, kind: input, shape index: {}]   ;;  %s2703_s7 = inlined_call_operand.vmem [shape: f32[1,32], index: 7, kind: input, shape index: {}]   ;;  %s2704_s8 = inlined_call_operand.vmem [shape: f32[1,32], index: 8, kind: input, shape index: {}]   ;;  %s2705_s9 = inlined_call_operand.vmem [shape: f32[1,32], index: 9, kind: input, shape index: {}]   ;;  %s2706_s10 = inlined_call_operand.vmem [shape: bf16[32,128], index: 10, kind: input, shape index: {}]   ;;  %s2707_s11 = inlined_call_operand.vmem [shape: f32[1,128], index: 11, kind: input, shape index: {}]   ;;  %s2708_s12 = inlined_call_operand.vmem [shape: bf16[128,32], index: 12, kind: input, shape index: {}]   ;;  %s2709_s13 = inlined_call_operand.vmem [shape: f32[1,32], index: 13, kind: input, shape index: {}]   ;;  %s2710_s14 = inlined_call_operand.vmem [shape: f32[1,32], index: 14, kind: input, shape index: {}]   ;;  %s2711_s15 = inlined_call_operand.vmem [shape: f32[1,32], index: 15, kind: input, shape index: {}]   ;;  %s2712_s16 = inlined_call_operand.vmem [shape: bf16[32,16], index: 16, kind: input, shape index: {}]   ;;  %s2713_s17 = inlined_call_operand.hbm [shape: f32[4,16], index: 17, kind: output, shape index: {}]  }
   0x1   :  { %2715 = sst [smem:[#allocation9_spill]] %s2696_s0 }
   0x2   :  { %2716 = sst [smem:[#allocation10_spill]] %s2697_s1 }
   0x3   :  { %22 = vsyncpa [#allocation5], 0 }
   0x4   :  { %23 = vsyncpa [#allocation4], 0  ;;  %s2717_s26 = sld [smem:[#allocation10_spill]] }
   0xa   :  { %s32_s27 = sshll.u32 %s2717_s26, 4  ;;  %s33_s27 = int_to_ptr.vmem [resolvable:$true] %s32_s27 }
   0xb   :  { %s2093_s28 = scalar_lea.vmem %s33_s27, 16  ;;  %p2098_p1 = scmp.lt.s32.totalorder %s33_s27, %s33_s27 }
   0xc   :  { %p2094_p0 = scmp.ne.s32.totalorder %s33_s27, %s2093_s28  ;;  %p2099_p2 = scmp.lt.s32.totalorder %s2093_s28, %s2093_s28 }
   0xe   :  { %p2100_p3 = por %p2099_p2, %p2098_p1 }
  0x10   :  { %p2101_p4 = pnand %p2100_p3, %p2094_p0 }
  0x12   :  { %2104 = shalt.err (!%p2101_p4)
}
  0x13   :  { %s2129_s29 = smov [#allocation3]  }
  0x14   :  { %35 = dma.vmem_to_smem %s33_s27, 16, %s2129_s29, [#allocation5]  }
  0x15   :  { %2125 = dma.done.wait [#allocation5], 16  }
  0x16   :  { %2126 = vsyncadd [#allocation5], 4294967280 }
  0x17   :  { %69 = sfence }
  0x18   :  { %s2718_s18 = sld [smem:[#allocation9_spill]]  ;;  %vm180_vm0 = vcmask 261120   ;;  %v1973_v28 = vld [vmem:[%s2700_s4 + $0x8] sm:$0xff]   ;;  %v1974_v29 = vld [vmem:[%s2700_s4] sm:$0xff]   ;;  %vm354_vm1 = vcmask 64512   ;;  %s2132_s19 = smov 96  }
  0x19   :  { %1807 = vmatprep.subr.bf16.mxu0 %v1973_v28  ;;  %v1694_v44 = vld [vmem:[%s2698_s2] ss:$0 sm:$0xff]  ;;  %s2133_s1 = smov 104   ;;  %s2134_s20 = smov 64  }
  0x1a   :  { %1808 = vmatpush3.bf16.msra.mxu0 %v1973_v28  ;;  %v1695_v49 = vld [vmem:[%s2699_s3] ss:$0 sm:$0xff]  ;;  %s2130_s3 = smov 120   ;;  %s2135_s23 = smov 8  }
  0x1b   :  { %1809 = vmatprep.subr.bf16.mxu0 %v1974_v29  ;;  %v1696_v63 = vld [vmem:[%s2701_s5] ss:$0 sm:$0xff]  ;;  %s2131_s5 = smov 112   ;;  %s2136_s24 = smov 16  }
  0x1c   :  { %s2137_s27 = smov 24  }
  0x1e   :  { %v71_v0 = vld [vmem:[%s2718_s18] sm:$0xff]  ;;  %v73_v1 = vld [vmem:[%s2718_s18 + $0x10] sm:$0xff]  ;;  %v72_v2 = vld [vmem:[%s2718_s18 + $0x8] sm:$0xff]  ;;  %1810 = vmatpush3.bf16.msra.mxu0 %v1974_v29 }
  0x1f   :  { %v181_v3 = vsel %vm180_vm0, %v71_v0, 0.0  ;;  %v187_v4 = vsel %vm180_vm0, %v73_v1, 0.0  ;;  %v74_v5 = vld [vmem:[%s2718_s18 + $0x18] sm:$0xff]  ;;  %v184_v6 = vsel %vm180_vm0, %v72_v2, 0.0 }
  0x20   :  { %182 = vadd.xlane.f32.xlu0 %v181_v3  ;;  %188 = vadd.xlane.f32.xlu1 %v187_v4  ;;  %v190_v7 = vsel %vm180_vm0, %v74_v5, 0.0 }
  0x24   :  { %185 = vadd.xlane.f32.xlu0 %v184_v6  ;;  %191 = vadd.xlane.f32.xlu1 %v190_v7 }
  0xa9   :  { %v183_v8 = vpop.xlane.xlu0 %182  ;;  %v189_v9 = vpop.xlane.xlu1 %188 }
  0xaa   :  { %v194_v10 = vmul.f32 0.03125, %v183_v8  ;;  %v196_v11 = vmul.f32 0.03125, %v189_v9 }
  0xac   :  { %v198_v12 = vsub.f32 %v71_v0, %v194_v10  ;;  %v200_v13 = vsub.f32 %v73_v1, %v196_v11 }
  0xad   :  { %v186_v14 = vpop.xlane.xlu0 %185  ;;  %v192_v15 = vpop.xlane.xlu1 %191 }
  0xae   :  { %v195_v16 = vmul.f32 0.03125, %v186_v14  ;;  %v197_v17 = vmul.f32 0.03125, %v192_v15  ;;  %v202_v18 = vmul.f32 %v198_v12, %v198_v12  ;;  %v204_v19 = vmul.f32 %v200_v13, %v200_v13 }
  0xb0   :  { %v199_v20 = vsub.f32 %v72_v2, %v195_v16  ;;  %v201_v21 = vsub.f32 %v74_v5, %v197_v17  ;;  %v206_v22 = vsel %vm180_vm0, %v202_v18, 0.0  ;;  %v212_v23 = vsel %vm180_vm0, %v204_v19, 0.0 }
  0xb1   :  { %207 = vadd.xlane.f32.xlu0 %v206_v22 }
  0xb2   :  { %v203_v24 = vmul.f32 %v199_v20, %v199_v20  ;;  %v205_v25 = vmul.f32 %v201_v21, %v201_v21 }
  0xb4   :  { %v209_v26 = vsel %vm180_vm0, %v203_v24, 0.0  ;;  %v215_v27 = vsel %vm180_vm0, %v205_v25, 0.0 }
  0xb5   :  { %213 = vadd.xlane.f32.xlu0 %v212_v23  ;;  %210 = vadd.xlane.f32.xlu1 %v209_v26 }
  0xb9   :  { %216 = vadd.xlane.f32.xlu1 %v215_v27 }
 0x13a   :  { %v208_v30 = vpop.xlane.xlu0 %207 }
 0x13b   :  { %v218_v31 = vmul.f32 0.03125, %v208_v30 }
 0x13d   :  { %v222_v32 = vadd.f32 1e-05, %v218_v31  ;;  %v75_v31 = vlaneseq }
 0x13e   :  { %v211_v33 = vpop.xlane.xlu1 %210  ;;  %v214_v34 = vpop.xlane.xlu0 %213 }
 0x13f   :  { %1989 = vrsqrt.f32 %v222_v32  ;;  %v219_v35 = vmul.f32 0.03125, %v211_v33  ;;  %v220_v36 = vmul.f32 0.03125, %v214_v34  ;;  %v76_v32 = vshrl.u32 %v75_v31, 7 }
 0x140   :  { %v81_v33 = vand.u32 127, %v75_v31 }
 0x141   :  { %v223_v37 = vadd.f32 1e-05, %v219_v35  ;;  %v224_v38 = vadd.f32 1e-05, %v220_v36  ;;  %v78_v34 = vadd.s32 16, %v76_v32  ;;  %v79_v35 = vadd.s32 24, %v76_v32 }
 0x142   :  { %v217_v39 = vpop.xlane.xlu1 %216  ;;  %vm136_vm2 = vcmp.ge.s32.totalorder %v81_v33, 16  ;;  %vm137_vm3 = vcmp.lt.s32.totalorder %v81_v33, 24  ;;  %vm95_vm6 = vcmp.lt.s32.totalorder %v81_v33, 8  ;;  %vm170_vm7 = vcmp.le.s32.totalorder %v81_v33, %v76_v32 }
 0x143   :  { %1991 = vrsqrt.f32 %v223_v37  ;;  %v221_v40 = vmul.f32 0.03125, %v217_v39  ;;  %vm138_vm4 = vmand %vm136_vm2, %vm137_vm3  ;;  %vm172_vm5 = vcmp.le.s32.totalorder %v81_v33, %v78_v34  ;;  %v77_v36 = vadd.s32 8, %v76_v32 }
 0x144   :  { %1993 = vrsqrt.f32 %v224_v38  ;;  %vm159_vm8 = vcmp.ge.s32.totalorder %v81_v33, 24  ;;  %vm160_vm9 = vcmp.lt.s32.totalorder %v81_v33, 32  ;;  %vm2333_vm10 = vmand %vm138_vm4, %vm172_vm5  ;;  %vm113_vm11 = vcmp.ge.s32.totalorder %v81_v33, 8 }
 0x145   :  { %v225_v41 = vadd.f32 1e-05, %v221_v40  ;;  %vm114_vm12 = vcmp.lt.s32.totalorder %v81_v33, 16  ;;  %vm2337_vm13 = vmand %vm95_vm6, %vm170_vm7  ;;  %vm173_vm15 = vcmp.le.s32.totalorder %v81_v33, %v79_v35  ;;  %vm171_vm3 = vcmp.le.s32.totalorder %v81_v33, %v77_v36 }
 0x146   :  { %vm161_vm14 = vmand %vm159_vm8, %vm160_vm9  ;;  %vm1131_vm6 = vcmask 130048   ;;  %vm1136_vm7 = vcmask 195584   ;;  %vm1572_vm8 = vcmask 1041408   ;;  %vm1574_vm9 = vcmask 1042432  }
 0x147   :  { %1995 = vrsqrt.f32 %v225_v41  ;;  %vm115_vm2 = vmand %vm113_vm11, %vm114_vm12  ;;  %vm2139_vm11 = vmmov 0   ;;  %vm1667_vm12 = vcmask 125952  }
 0x148   :  { %vm2351_vm4 = vmand %vm161_vm14, %vm173_vm15 }
 0x149   :  { %vm2355_vm5 = vmand %vm115_vm2, %vm171_vm3 }
 0x14c   :  { %v1990_v42 = vpop.eup %1989 }
 0x14d   :  { %v230_v43 = vmul.f32 %v1990_v42, %v198_v12 }
 0x14f   :  { %v240_v48 = vmul.f32 %v1694_v44, %v230_v43 }
 0x150   :  { %v1992_v45 = vpop.eup %1991 }
 0x151   :  { %v1994_v46 = vpop.eup %1993  ;;  %v231_v47 = vmul.f32 %v1992_v45, %v199_v20  ;;  %v250_v53 = vadd.f32 %v1695_v49, %v240_v48 }
 0x152   :  { %v232_v50 = vmul.f32 %v1994_v46, %v200_v13 }
 0x153   :  { %v241_v51 = vmul.f32 %v1694_v44, %v231_v47 }
 0x154   :  { %v1996_v52 = vpop.eup %1995  ;;  %v242_v56 = vmul.f32 %v1694_v44, %v232_v50 }
 0x155   :  { %v251_v54 = vadd.f32 %v1695_v49, %v241_v51  ;;  %v233_v55 = vmul.f32 %v1996_v52, %v201_v21 }
 0x156   :  { %v252_v59 = vadd.f32 %v1695_v49, %v242_v56 }
 0x157   :  { %v254_v57 = vpack.c.bf16 %v251_v54, %v250_v53  ;;  %v243_v58 = vmul.f32 %v1694_v44, %v233_v55 }
 0x159   :  { %1811 = vmatprep.mubr.msk.bf16.mxu0 %vm180_vm0, %v254_v57  ;;  %v253_v60 = vadd.f32 %v1695_v49, %v243_v58 }
 0x15b   :  { %v255_v61 = vpack.c.bf16 %v253_v60, %v252_v59 }
 0x15d   :  { %1812 = vmatmul.mubr.msk.bf16.vlgmr.msra.gmra.mxu0 %vm180_vm0, %v255_v61 }
 0x21d   :  { %v1813_v62 = vpop.f32.mrf.mxu0 }
 0x21e   :  { %v328_v2 = vadd.f32 %v1813_v62, %v1696_v63 }
 0x21f   :  { %v319_v0 = vpop.f32.mrf.mxu0 }
 0x220   :  { %v320_v5 = vadd.f32 %v1696_v63, %v319_v0 }
 0x221   :  { %v1814_v1 = vpop.f32.mrf.mxu0 }
 0x222   :  { %v331_v3 = vadd.f32 %v1814_v1, %v1696_v63 }
 0x223   :  { %v322_v4 = vpop.f32.mrf.mxu0 }
 0x224   :  { %v2271_v6 = vpack.c.bf16 %v331_v3, %v328_v2  ;;  %v323_v7 = vadd.f32 %v1696_v63, %v322_v4 }
 0x226   :  { %v2273_v8 = vpack.c.bf16 %v323_v7, %v320_v5  ;;  %340 = vrot.lane.b32.xlu0 %v2271_v6, %s2130_s3 }
 0x228   :  { %338 = vrot.lane.b32.xlu1 %v2273_v8, %s2130_s3  ;;  %1819 = vmatprep.mubr.msk.bf16.mxu1 %vm354_vm1, %v2273_v8 }
 0x22a   :  { %342 = vrot.lane.b32.xlu0 %v2273_v8, %s2131_s5 }
 0x22c   :  { %344 = vrot.lane.b32.xlu1 %v2271_v6, %s2131_s5 }
 0x22e   :  { %352 = vrot.lane.b32.xlu0 %v2271_v6, %s2132_s19 }
 0x230   :  { %348 = vrot.lane.b32.xlu1 %v2271_v6, %s2133_s1 }
 0x232   :  { %350 = vrot.lane.b32.xlu0 %v2273_v8, %s2132_s19 }
 0x234   :  { %346 = vrot.lane.b32.xlu1 %v2273_v8, %s2133_s1  ;;  %s1742_s1 = sld [smem:[#allocation3 + $0x1]] }
 0x23a   :  { %s1553_s21 = scalar_lea.vmem [#allocation2], %s1742_s1 }
 0x298   :  { %v2285_v9 = vpop.permute.xlu0 %340 }
 0x299   :  { %418 = vrot.lane.b32.xlu1 %v2285_v9, %s2132_s19 }
 0x29a   :  { %v2288_v10 = vpop.permute.xlu1 %338 }
 0x29b   :  { %1827 = vmatprep.mubr.msk.bf16.mxu0 %vm354_vm1, %v2288_v10 }
 0x29c   :  { %v2292_v11 = vpop.permute.xlu0 %342 }
 0x29d   :  { %416 = vrot.lane.b32.xlu1 %v2288_v10, %s2132_s19 }
 0x29e   :  { %v2295_v12 = vpop.permute.xlu1 %344 }
 0x29f   :  { %483 = vrot.lane.b32.xlu0 %v2295_v12, %s2132_s19 }
 0x2a0   :  { %v353_v13 = vpop.permute.xlu0 %352 }
 0x2a1   :  { %1923 = vmatprep.subr.msk.bf16.mxu1 %vm354_vm1, %v353_v13  ;;  %v365_v14 = vsel %vm354_vm1, %v353_v13, 0 }
 0x2a2   :  { %1816 = vmatpush3.bf16.xpose.msra.mxu1 %v365_v14  ;;  %v2300_v15 = vpop.permute.xlu1 %348 }
 0x2a3   :  { %481 = vrot.lane.b32.xlu0 %v2292_v11, %s2132_s19  ;;  %548 = vrot.lane.b32.xlu1 %v2300_v15, %s2132_s19 }
 0x2a4   :  { %v351_v16 = vpop.permute.xlu0 %350 }
 0x2a5   :  { %1924 = vmatprep.subr.msk.bf16.mxu1 %vm354_vm1, %v351_v16  ;;  %v362_v18 = vsel %vm354_vm1, %v351_v16, 0 }
 0x2a6   :  { %v2305_v17 = vpop.permute.xlu1 %346 }
 0x2a7   :  { %546 = vrot.lane.b32.xlu1 %v2305_v17, %s2132_s19 }
 0x2aa   :  { %1818 = vmatpush3.bf16.xpose.msra.mxu1 %v362_v18 }
 0x2b1   :  { %1820 = vmatmul.mubr.msk.bf16.vlgmr.msra.gmra.mxu1 %vm354_vm1, %v2271_v6 }
 0x2b2   :  { %1835 = vmatprep.mubr.msk.bf16.mxu1 %vm354_vm1, %v2292_v11 }
 0x30b   :  { %v419_v19 = vpop.permute.xlu1 %418 }
 0x30c   :  { %v430_v20 = vsel %vm354_vm1, %v419_v19, 0  ;;  %1925 = vmatprep.subr.msk.bf16.mxu0 %vm354_vm1, %v419_v19 }
 0x30d   :  { %1824 = vmatpush3.bf16.xpose.msra.mxu0 %v430_v20 }
 0x30f   :  { %v417_v21 = vpop.permute.xlu1 %416 }
 0x310   :  { %1926 = vmatprep.subr.msk.bf16.mxu0 %vm354_vm1, %v417_v21  ;;  %v427_v24 = vsel %vm354_vm1, %v417_v21, 0 }
 0x311   :  { %v484_v22 = vpop.permute.xlu0 %483 }
 0x312   :  { %v495_v23 = vsel %vm354_vm1, %v484_v22, 0  ;;  %1927 = vmatprep.subr.msk.bf16.mxu1 %vm354_vm1, %v484_v22 }
 0x313   :  { %1832 = vmatpush3.bf16.xpose.msra.mxu1 %v495_v23 }
 0x315   :  { %v482_v25 = vpop.permute.xlu0 %481  ;;  %1826 = vmatpush3.bf16.xpose.msra.mxu0 %v427_v24  ;;  %v549_v26 = vpop.permute.xlu1 %548 }
 0x316   :  { %1928 = vmatprep.subr.msk.bf16.mxu1 %vm354_vm1, %v482_v25  ;;  %1929 = vmatprep.subr.msk.bf16.mxu0 %vm354_vm1, %v549_v26  ;;  %v492_v27 = vsel %vm354_vm1, %v482_v25, 0  ;;  %v560_v28 = vsel %vm354_vm1, %v549_v26, 0 }
 0x319   :  { %v547_v29 = vpop.permute.xlu1 %546 }
 0x31a   :  { %v557_v30 = vsel %vm354_vm1, %v547_v29, 0 }
 0x31b   :  { %1834 = vmatpush3.bf16.xpose.msra.mxu1 %v492_v27 }
 0x31c   :  { %1828 = vmatmul.mubr.msk.bf16.vlgmr.msra.gmra.mxu0 %vm354_vm1, %v2285_v9 }
 0x31d   :  { %1840 = vmatpush3.bf16.xpose.msra.mxu0 %v560_v28  ;;  %1843 = vmatprep.mubr.msk.bf16.mxu0 %vm354_vm1, %v2305_v17 }
 0x31e   :  { %1930 = vmatprep.subr.msk.bf16.mxu0 %vm354_vm1, %v547_v29 }
 0x322   :  { %1836 = vmatmul.mubr.msk.bf16.vlgmr.msra.gmra.mxu1 %vm354_vm1, %v2295_v12 }
 0x325   :  { %1842 = vmatpush3.bf16.xpose.msra.mxu0 %v557_v30 }
 0x32c   :  { %1844 = vmatmul.mubr.msk.bf16.vlgmr.msra.gmra.mxu0 %vm354_vm1, %v2300_v15 }
 0x371   :  { %v1821_v37 = vpop.f32.mrf.mxu1 }
 0x372   :  { %v613_v39 = vmul.f32 0.35355338, %v1821_v37 }
 0x373   :  { %v401_v41 = vpop.f32.mrf.mxu1 }
 0x374   :  { %v611_v42 = vmul.f32 0.35355338, %v401_v41  ;;  %v2343_v43 = vsel %vm2333_vm10, %v613_v39, -inf }
 0x375   :  { %v1822_v44 = vpop.f32.mrf.mxu1  ;;  %v657_v45 = vsel %vm180_vm0, %v2343_v43, -inf }
 0x376   :  { %v614_v46 = vmul.f32 0.35355338, %v1822_v44  ;;  %658 = vmax.xlane.f32.xlu0 %v657_v45  ;;  %v2349_v47 = vsel %vm2337_vm13, %v611_v42, -inf }
 0x377   :  { %v404_v49 = vpop.f32.mrf.mxu1  ;;  %v651_v52 = vsel %vm180_vm0, %v2349_v47, -inf }
 0x378   :  { %v612_v51 = vmul.f32 0.35355338, %v404_v49  ;;  %v2367_v54 = vsel %vm2351_vm4, %v614_v46, -inf }
 0x379   :  { %v660_v56 = vsel %vm180_vm0, %v2367_v54, -inf }
 0x37a   :  { %652 = vmax.xlane.f32.xlu0 %v651_v52  ;;  %v2363_v53 = vsel %vm2355_vm5, %v612_v51, -inf }
 0x37b   :  { %v654_v55 = vsel %vm180_vm0, %v2363_v53, -inf }
 0x37c   :  { %655 = vmax.xlane.f32.xlu1 %v654_v55 }
 0x37e   :  { %661 = vmax.xlane.f32.xlu0 %v660_v56 }
 0x3dc   :  { %v1829_v57 = vpop.f32.mrf.mxu0 }
 0x3dd   :  { %v617_v58 = vmul.f32 0.35355338, %v1829_v57 }
 0x3de   :  { %v466_v59 = vpop.f32.mrf.mxu0 }
 0x3df   :  { %v2375_v60 = vsel %vm2333_vm10, %v617_v58, -inf  ;;  %v615_v0 = vmul.f32 0.35355338, %v466_v59 }
 0x3e0   :  { %v1830_v61 = vpop.f32.mrf.mxu0  ;;  %v669_v62 = vsel %vm180_vm0, %v2375_v60, -inf }
 0x3e1   :  { %v618_v63 = vmul.f32 0.35355338, %v1830_v61  ;;  %670 = vmax.xlane.f32.xlu0 %v669_v62  ;;  %v2393_v18 = vsel %vm2337_vm13, %v615_v0, -inf }
 0x3e2   :  { %v1837_v1 = vpop.f32.mrf.mxu1  ;;  %v469_v4 = vpop.f32.mrf.mxu0  ;;  %v663_v24 = vsel %vm180_vm0, %v2393_v18, -inf }
 0x3e3   :  { %v621_v2 = vmul.f32 0.35355338, %v1837_v1  ;;  %v2381_v3 = vsel %vm2351_vm4, %v618_v63, -inf  ;;  %v616_v19 = vmul.f32 0.35355338, %v469_v4 }
 0x3e4   :  { %v531_v5 = vpop.f32.mrf.mxu1  ;;  %v672_v7 = vsel %vm180_vm0, %v2381_v3, -inf }
 0x3e5   :  { %673 = vmax.xlane.f32.xlu1 %v672_v7  ;;  %v2387_v13 = vsel %vm2333_vm10, %v621_v2, -inf  ;;  %v619_v20 = vmul.f32 0.35355338, %v531_v5  ;;  %v2409_v28 = vsel %vm2355_vm5, %v616_v19, -inf }
 0x3e6   :  { %v1838_v14 = vpop.f32.mrf.mxu1  ;;  %v681_v16 = vsel %vm180_vm0, %v2387_v13, -inf  ;;  %v666_v33 = vsel %vm180_vm0, %v2409_v28, -inf }
 0x3e7   :  { %v622_v21 = vmul.f32 0.35355338, %v1838_v14  ;;  %682 = vmax.xlane.f32.xlu0 %v681_v16  ;;  %v2405_v27 = vsel %vm2337_vm13, %v619_v20, -inf }
 0x3e8   :  { %v534_v22 = vpop.f32.mrf.mxu1  ;;  %v675_v32 = vsel %vm180_vm0, %v2405_v27, -inf }
 0x3e9   :  { %v2397_v23 = vsel %vm2351_vm4, %v622_v21, -inf  ;;  %v620_v26 = vmul.f32 0.35355338, %v534_v22 }
 0x3ea   :  { %v684_v25 = vsel %vm180_vm0, %v2397_v23, -inf }
 0x3eb   :  { %664 = vmax.xlane.f32.xlu0 %v663_v24  ;;  %685 = vmax.xlane.f32.xlu1 %v684_v25  ;;  %v2421_v36 = vsel %vm2355_vm5, %v620_v26, -inf }
 0x3ec   :  { %v1845_v29 = vpop.f32.mrf.mxu0  ;;  %v678_v39 = vsel %vm180_vm0, %v2421_v36, -inf }
 0x3ed   :  { %v625_v30 = vmul.f32 0.35355338, %v1845_v29 }
 0x3ee   :  { %v596_v31 = vpop.f32.mrf.mxu0 }
 0x3ef   :  { %v623_v34 = vmul.f32 0.35355338, %v596_v31  ;;  %676 = vmax.xlane.f32.xlu0 %v675_v32  ;;  %667 = vmax.xlane.f32.xlu1 %v666_v33  ;;  %v2417_v35 = vsel %vm2333_vm10, %v625_v30, -inf  ;;  %vm1578_vm10 = vcmask 257024  }
 0x3f0   :  { %v693_v37 = vsel %vm180_vm0, %v2417_v35, -inf }
 0x3f1   :  { %v2429_v41 = vsel %vm2337_vm13, %v623_v34, -inf }
 0x3f2   :  { %v687_v38 = vsel %vm180_vm0, %v2429_v41, -inf }
 0x3f3   :  { %694 = vmax.xlane.f32.xlu0 %v693_v37  ;;  %679 = vmax.xlane.f32.xlu1 %v678_v39 }
 0x3f7   :  { %688 = vmax.xlane.f32.xlu0 %v687_v38 }
 0x3ff   :  { %v659_v40 = vpop.xlane.xlu0 %658 }
 0x400   :  { %v701_v42 = vsub.f32 %v2343_v43, %v659_v40 }
 0x402   :  { %v719_v45 = vmul.f32 1.442695, %v701_v42 }
 0x403   :  { %v653_v44 = vpop.xlane.xlu0 %652 }
 0x404   :  { %835 = vrot.lane.b32.xlu1 %v2273_v8, %s2134_s20  ;;  %v699_v46 = vsub.f32 %v2349_v47, %v653_v44  ;;  %1997 = vpow2.f32 %v719_v45 }
 0x405   :  { %v656_v59 = vpop.xlane.xlu1 %655 }
 0x406   :  { %v715_v8 = vmul.f32 1.442695, %v699_v46  ;;  %v700_v61 = vsub.f32 %v2363_v53, %v656_v59 }
 0x407   :  { %v662_v57 = vpop.xlane.xlu0 %661 }
 0x408   :  { %898 = vrot.lane.b32.xlu1 %v2285_v9, %s2134_s20  ;;  %1999 = vpow2.f32 %v715_v8  ;;  %v1846_v9 = vpop.f32.mrf.mxu0  ;;  %v702_v58 = vsub.f32 %v2367_v54, %v662_v57  ;;  %v717_v62 = vmul.f32 1.442695, %v700_v61 }
 0x409   :  { %v626_v49 = vmul.f32 0.35355338, %v1846_v9 }
 0x40a   :  { %v599_v51 = vpop.f32.mrf.mxu0  ;;  %v721_v50 = vmul.f32 1.442695, %v702_v58 }
 0x40b   :  { %v624_v52 = vmul.f32 0.35355338, %v599_v51 }
 0x40c   :  { %896 = vrot.lane.b32.xlu1 %v2288_v10, %s2134_s20  ;;  %2001 = vpow2.f32 %v721_v50 }
 0x40d   :  { %837 = vrot.lane.b32.xlu0 %v2271_v6, %s2134_s20  ;;  %v2449_v6 = vsel %vm2351_vm4, %v626_v49, -inf  ;;  %v2459_v55 = vsel %vm2355_vm5, %v624_v52, -inf  ;;  %2003 = vpow2.f32 %v717_v62 }
 0x40e   :  { %v696_v43 = vsel %vm180_vm0, %v2449_v6, -inf  ;;  %v690_v48 = vsel %vm180_vm0, %v2459_v55, -inf }
 0x411   :  { %959 = vrot.lane.b32.xlu0 %v2295_v12, %s2134_s20  ;;  %v2445_v10 = vpop.eup %1997 }
 0x412   :  { %v753_v12 = vsel %vm180_vm0, %v2445_v10, 0.0 }
 0x415   :  { %v2455_v47 = vpop.eup %1999 }
 0x416   :  { %v747_v56 = vsel %vm180_vm0, %v2455_v47, 0.0 }
 0x419   :  { %v2469_v63 = vpop.eup %2001 }
 0x41a   :  { %v756_v0 = vsel %vm180_vm0, %v2469_v63, 0.0  ;;  %v2473_v1 = vpop.eup %2003 }
 0x41b   :  { %v750_v54 = vsel %vm180_vm0, %v2473_v1, 0.0 }
 0x430   :  { %754 = vadd.xlane.f32.xlu0 %v753_v12  ;;  %697 = vmax.xlane.f32.xlu1 %v696_v43 }
 0x434   :  { %748 = vadd.xlane.f32.xlu0 %v747_v56  ;;  %691 = vmax.xlane.f32.xlu1 %v690_v48 }
 0x445   :  { %1020 = vrot.lane.b32.xlu1 %v2300_v15, %s2134_s20 }
 0x469   :  { %757 = vadd.xlane.f32.xlu1 %v756_v0 }
 0x46a   :  { %v671_v2 = vpop.xlane.xlu0 %670 }
 0x46b   :  { %v705_v15 = vsub.f32 %v2375_v60, %v671_v2 }
 0x46d   :  { %v727_v4 = vmul.f32 1.442695, %v705_v15  ;;  %751 = vadd.xlane.f32.xlu1 %v750_v54 }
 0x46e   :  { %v674_v53 = vpop.xlane.xlu1 %673 }
 0x46f   :  { %2005 = vpow2.f32 %v727_v4  ;;  %v706_v5 = vsub.f32 %v2381_v3, %v674_v53 }
 0x470   :  { %v683_v7 = vpop.xlane.xlu0 %682 }
 0x471   :  { %v729_v14 = vmul.f32 1.442695, %v706_v5  ;;  %v709_v16 = vsub.f32 %v2387_v13, %v683_v7 }
 0x473   :  { %2007 = vpow2.f32 %v729_v14  ;;  %v735_v19 = vmul.f32 1.442695, %v709_v16 }
 0x474   :  { %v665_v20 = vpop.xlane.xlu0 %664  ;;  %v686_v21 = vpop.xlane.xlu1 %685 }
 0x475   :  { %2009 = vpow2.f32 %v735_v19  ;;  %v703_v60 = vsub.f32 %v2393_v18, %v665_v20  ;;  %v710_v22 = vsub.f32 %v2397_v23, %v686_v21 }
 0x477   :  { %v723_v24 = vmul.f32 1.442695, %v703_v60  ;;  %v737_v25 = vmul.f32 1.442695, %v710_v22 }
 0x478   :  { %v677_v26 = vpop.xlane.xlu0 %676  ;;  %v668_v29 = vpop.xlane.xlu1 %667 }
 0x479   :  { %2011 = vpow2.f32 %v723_v24  ;;  %v707_v3 = vsub.f32 %v2405_v27, %v677_v26  ;;  %v704_v30 = vsub.f32 %v2409_v28, %v668_v29 }
 0x47a   :  { %2013 = vpow2.f32 %v737_v25 }
 0x47b   :  { %v731_v13 = vmul.f32 1.442695, %v707_v3  ;;  %v725_v31 = vmul.f32 1.442695, %v704_v30 }
 0x47c   :  { %v2484_v32 = vpop.eup %2005  ;;  %v695_v33 = vpop.xlane.xlu0 %694 }
 0x47d   :  { %v680_v34 = vpop.xlane.xlu1 %679  ;;  %2015 = vpow2.f32 %v731_v13  ;;  %v713_v18 = vsub.f32 %v2417_v35, %v695_v33  ;;  %v765_v37 = vsel %vm180_vm0, %v2484_v32, 0.0 }
 0x47e   :  { %v708_v23 = vsub.f32 %v2421_v36, %v680_v34  ;;  %2017 = vpow2.f32 %v725_v31  ;;  %766 = vadd.xlane.f32.xlu0 %v765_v37 }
 0x47f   :  { %v743_v27 = vmul.f32 1.442695, %v713_v18 }
 0x480   :  { %v733_v39 = vmul.f32 1.442695, %v708_v23  ;;  %v2490_v28 = vpop.eup %2007  ;;  %v689_v38 = vpop.xlane.xlu0 %688 }
 0x481   :  { %2019 = vpow2.f32 %v743_v27  ;;  %v711_v40 = vsub.f32 %v2429_v41, %v689_v38  ;;  %v768_v42 = vsel %vm180_vm0, %v2490_v28, 0.0  ;;  %v836_v45 = vpop.permute.xlu1 %835 }
 0x482   :  { %v2495_v44 = vpop.eup %2009  ;;  %2021 = vpow2.f32 %v733_v39  ;;  %769 = vadd.xlane.f32.xlu1 %v768_v42 }
 0x483   :  { %v739_v35 = vmul.f32 1.442695, %v711_v40  ;;  %v777_v36 = vsel %vm180_vm0, %v2495_v44, 0.0 }
 0x484   :  { %778 = vadd.xlane.f32.xlu0 %v777_v36  ;;  %v838_v46 = vpop.permute.xlu0 %837 }
 0x485   :  { %2023 = vpow2.f32 %v739_v35  ;;  %1847 = vmatprep.subr.bf16.mxu0 %v838_v46  ;;  %v899_v12 = vpop.permute.xlu1 %898 }
 0x486   :  { %v2499_v8 = vpop.eup %2011  ;;  %1848 = vmatpush3.bf16.msra.mxu0 %v838_v46 }
 0x487   :  { %v2501_v41 = vpop.eup %2013  ;;  %1849 = vmatprep.subr.bf16.mxu0 %v836_v45  ;;  %v759_v9 = vsel %vm180_vm0, %v2499_v8, 0.0 }
 0x488   :  { %760 = vadd.xlane.f32.xlu0 %v759_v9  ;;  %v960_v49 = vpop.permute.xlu0 %959  ;;  %v780_v51 = vsel %vm180_vm0, %v2501_v41, 0.0 }
 0x489   :  { %781 = vadd.xlane.f32.xlu1 %v780_v51  ;;  %1863 = vmatprep.subr.bf16.mxu1 %v960_v49  ;;  %v897_v0 = vpop.permute.xlu1 %896 }
 0x48a   :  { %v2507_v52 = vpop.eup %2015  ;;  %1850 = vmatpush3.bf16.msra.mxu0 %v836_v45  ;;  %1864 = vmatpush3.bf16.msra.mxu1 %v960_v49 }
 0x48b   :  { %v2509_v43 = vpop.eup %2017  ;;  %1855 = vmatprep.subr.bf16.mxu0 %v899_v12  ;;  %v771_v56 = vsel %vm180_vm0, %v2507_v52, 0.0 }
 0x48c   :  { %772 = vadd.xlane.f32.xlu0 %v771_v56  ;;  %v762_v48 = vsel %vm180_vm0, %v2509_v43, 0.0 }
 0x48d   :  { %763 = vadd.xlane.f32.xlu1 %v762_v48 }
 0x48e   :  { %v2515_v57 = vpop.eup %2019 }
 0x48f   :  { %v2517_v58 = vpop.eup %2021  ;;  %v789_v59 = vsel %vm180_vm0, %v2515_v57, 0.0 }
 0x490   :  { %790 = vadd.xlane.f32.xlu0 %v789_v59  ;;  %v774_v61 = vsel %vm180_vm0, %v2517_v58, 0.0 }
 0x491   :  { %775 = vadd.xlane.f32.xlu1 %v774_v61 }
 0x492   :  { %v2523_v50 = vpop.eup %2023 }
 0x493   :  { %v783_v62 = vsel %vm180_vm0, %v2523_v50, 0.0 }
 0x494   :  { %784 = vadd.xlane.f32.xlu0 %v783_v62 }
 0x4aa   :  { %957 = vrot.lane.b32.xlu0 %v2292_v11, %s2134_s20 }
 0x4b9   :  { %v698_v2 = vpop.xlane.xlu1 %697 }
 0x4ba   :  { %v714_v15 = vsub.f32 %v2449_v6, %v698_v2  ;;  %v755_v6 = vpop.xlane.xlu0 %754 }
 0x4bc   :  { %v745_v54 = vmul.f32 1.442695, %v714_v15 }
 0x4bd   :  { %v692_v4 = vpop.xlane.xlu1 %691 }
 0x4be   :  { %2025 = vpow2.f32 %v745_v54  ;;  %v712_v53 = vsub.f32 %v2459_v55, %v692_v4  ;;  %v749_v55 = vpop.xlane.xlu0 %748 }
 0x4c0   :  { %v741_v5 = vmul.f32 1.442695, %v712_v53 }
 0x4c1   :  { %v2541_v19 = vpop.permute.xlu1 %1020 }
 0x4c2   :  { %2027 = vpow2.f32 %v741_v5 }
 0x4cb   :  { %v2531_v7 = vpop.eup %2025 }
 0x4cc   :  { %v792_v14 = vsel %vm180_vm0, %v2531_v7, 0.0 }
 0x4cd   :  { %793 = vadd.xlane.f32.xlu1 %v792_v14 }
 0x4cf   :  { %v2535_v16 = vpop.eup %2027 }
 0x4d0   :  { %v786_v11 = vsel %vm180_vm0, %v2535_v16, 0.0 }
 0x4d1   :  { %787 = vadd.xlane.f32.xlu1 %v786_v11 }
 0x4e2   :  { %1018 = vrot.lane.b32.xlu1 %v2305_v17, %s2134_s20  ;;  %s1744_s20 = sld [smem:[#allocation3 + $0x3]] }
 0x4f2   :  { %v758_v20 = vpop.xlane.xlu1 %757 }
 0x4f3   :  { %2029 = vrcp.f32 %v758_v20 }
 0x4f4   :  { %2031 = vrcp.f32 %v749_v55 }
 0x4f5   :  { %2033 = vrcp.f32 %v755_v6 }
 0x4f6   :  { %v752_v21 = vpop.xlane.xlu1 %751 }
 0x4f7   :  { %2035 = vrcp.f32 %v752_v21 }
 0x500   :  { %v2030_v60 = vpop.eup %2029 }
 0x501   :  { %v2032_v22 = vpop.eup %2031  ;;  %v814_v26 = vmul.f32 %v2030_v60, %v2469_v63 }
 0x502   :  { %v2034_v24 = vpop.eup %2033  ;;  %v811_v29 = vmul.f32 %v2032_v22, %v2455_v47 }
 0x503   :  { %v813_v3 = vmul.f32 %v2034_v24, %v2445_v10 }
 0x504   :  { %v2036_v25 = vpop.eup %2035 }
 0x505   :  { %v812_v17 = vmul.f32 %v2036_v25, %v2473_v1  ;;  %v828_v13 = vpack.c.bf16 %v814_v26, %v813_v3  ;;  %v1976_v3 = vld [vmem:[%s2702_s6] sm:$0xff]  }
 0x507   :  { %v827_v30 = vpack.c.bf16 %v812_v17, %v811_v29  ;;  %v767_v31 = vpop.xlane.xlu0 %766 }
 0x509   :  { %1851 = vmatprep.mubr.msk.bf16.mxu0 %vm180_vm0, %v827_v30 }
 0x50a   :  { %1852 = vmatmul.mubr.msk.bf16.vlgmr.msra.gmra.mxu0 %vm180_vm0, %v828_v13 }
 0x50b   :  { %1856 = vmatpush3.bf16.msra.mxu0 %v899_v12  ;;  %v770_v34 = vpop.xlane.xlu1 %769 }
 0x50c   :  { %1857 = vmatprep.subr.bf16.mxu0 %v897_v0  ;;  %2037 = vrcp.f32 %v770_v34 }
 0x50d   :  { %v779_v33 = vpop.xlane.xlu0 %778 }
 0x50f   :  { %1858 = vmatpush3.bf16.msra.mxu0 %v897_v0 }
 0x510   :  { %1871 = vmatprep.subr.bf16.mxu0 %v2541_v19 }
 0x511   :  { %v761_v63 = vpop.xlane.xlu0 %760 }
 0x512   :  { %v782_v47 = vpop.xlane.xlu1 %781  ;;  %2039 = vrcp.f32 %v761_v63 }
 0x513   :  { %2041 = vrcp.f32 %v767_v31 }
 0x515   :  { %v773_v1 = vpop.xlane.xlu0 %772 }
 0x516   :  { %v764_v10 = vpop.xlane.xlu1 %763 }
 0x517   :  { %2043 = vrcp.f32 %v764_v10 }
 0x518   :  { %2045 = vrcp.f32 %v782_v47 }
 0x519   :  { %2047 = vrcp.f32 %v773_v1  ;;  %v791_v18 = vpop.xlane.xlu0 %790  ;;  %v2038_v27 = vpop.eup %2037 }
 0x51a   :  { %2049 = vrcp.f32 %v779_v33  ;;  %v776_v23 = vpop.xlane.xlu1 %775  ;;  %v818_v35 = vmul.f32 %v2038_v27, %v2490_v28 }
 0x51b   :  { %2051 = vrcp.f32 %v776_v23 }
 0x51d   :  { %v785_v37 = vpop.xlane.xlu0 %784 }
 0x51f   :  { %v2040_v38 = vpop.eup %2039 }
 0x520   :  { %v2042_v40 = vpop.eup %2041  ;;  %v815_v45 = vmul.f32 %v2040_v38, %v2499_v8 }
 0x521   :  { %v958_v39 = vpop.permute.xlu0 %957  ;;  %v817_v49 = vmul.f32 %v2042_v40, %v2484_v32 }
 0x522   :  { %1865 = vmatprep.subr.bf16.mxu1 %v958_v39 }
 0x523   :  { %1866 = vmatpush3.bf16.msra.mxu1 %v958_v39  ;;  %v830_v48 = vpack.c.bf16 %v818_v35, %v817_v49 }
 0x524   :  { %v2044_v42 = vpop.eup %2043 }
 0x525   :  { %v2046_v36 = vpop.eup %2045  ;;  %v816_v46 = vmul.f32 %v2044_v42, %v2509_v43 }
 0x526   :  { %v2048_v9 = vpop.eup %2047  ;;  %v822_v59 = vmul.f32 %v2046_v36, %v2501_v41 }
 0x527   :  { %v2050_v51 = vpop.eup %2049  ;;  %v829_v12 = vpack.c.bf16 %v816_v46, %v815_v45  ;;  %v819_v61 = vmul.f32 %v2048_v9, %v2507_v52 }
 0x528   :  { %v2052_v56 = vpop.eup %2051  ;;  %v821_v8 = vmul.f32 %v2050_v51, %v2495_v44 }
 0x529   :  { %1859 = vmatprep.mubr.msk.bf16.mxu0 %vm180_vm0, %v829_v12  ;;  %v820_v28 = vmul.f32 %v2052_v56, %v2517_v58 }
 0x52a   :  { %1860 = vmatmul.mubr.msk.bf16.vlgmr.msra.gmra.mxu0 %vm180_vm0, %v830_v48  ;;  %v832_v32 = vpack.c.bf16 %v822_v59, %v821_v8 }
 0x52b   :  { %1872 = vmatpush3.bf16.msra.mxu0 %v2541_v19  ;;  %v831_v43 = vpack.c.bf16 %v820_v28, %v819_v61 }
 0x52d   :  { %1867 = vmatprep.mubr.msk.bf16.mxu1 %vm180_vm0, %v831_v43 }
 0x52e   :  { %1868 = vmatmul.mubr.msk.bf16.vlgmr.msra.gmra.mxu1 %vm180_vm0, %v832_v32 }
 0x556   :  { %v794_v62 = vpop.xlane.xlu1 %793 }
 0x557   :  { %2053 = vrcp.f32 %v794_v62 }
 0x558   :  { %2055 = vrcp.f32 %v785_v37 }
 0x559   :  { %2057 = vrcp.f32 %v791_v18 }
 0x55a   :  { %v788_v41 = vpop.xlane.xlu1 %787 }
 0x55b   :  { %2059 = vrcp.f32 %v788_v41 }
 0x55e   :  { %v1019_v52 = vpop.permute.xlu1 %1018 }
 0x55f   :  { %1873 = vmatprep.subr.bf16.mxu0 %v1019_v52 }
 0x560   :  { %1874 = vmatpush3.bf16.msra.mxu0 %v1019_v52 }
 0x564   :  { %v2054_v58 = vpop.eup %2053 }
 0x565   :  { %v2056_v0 = vpop.eup %2055  ;;  %v826_v15 = vmul.f32 %v2054_v58, %v2531_v7 }
 0x566   :  { %v2058_v44 = vpop.eup %2057  ;;  %v823_v54 = vmul.f32 %v2056_v0, %v2523_v50  ;;  %v1975_v50 = vld [vmem:[%s2702_s6 + $0x8] sm:$0xff]  }
 0x567   :  { %v825_v53 = vmul.f32 %v2058_v44, %v2515_v57  ;;  %1879 = vmatprep.subr.bf16.mxu1 %v1975_v50 }
 0x568   :  { %v2060_v2 = vpop.eup %2059  ;;  %1880 = vmatpush3.bf16.msra.mxu1 %v1975_v50 }
 0x569   :  { %v824_v4 = vmul.f32 %v2060_v2, %v2535_v16  ;;  %v834_v14 = vpack.c.bf16 %v826_v15, %v825_v53  ;;  %1881 = vmatprep.subr.bf16.mxu1 %v1976_v3  ;;  %v2089_v15 = vld [vmem:[%s2718_s18 + $0x10] sm:$0xff] }
 0x56b   :  { %v833_v5 = vpack.c.bf16 %v824_v4, %v823_v54  ;;  %v2090_v4 = vld [vmem:[%s2718_s18] sm:$0xff] }
 0x56c   :  { %1882 = vmatpush3.bf16.msra.mxu1 %v1976_v3 }
 0x56d   :  { %1875 = vmatprep.mubr.msk.bf16.mxu0 %vm180_vm0, %v833_v5  ;;  %v1721_v5 = vld [vmem:[%s2703_s7] ss:$0 sm:$0xff] }
 0x56e   :  { %1876 = vmatmul.mubr.msk.bf16.vlgmr.msra.gmra.mxu0 %vm180_vm0, %v834_v14 }
 0x5ca   :  { %v1853_v11 = vpop.f32.mrf.mxu0 }
 0x5cc   :  { %v881_v6 = vpop.f32.mrf.mxu0 }
 0x5ce   :  { %v1854_v19 = vpop.f32.mrf.mxu0 }
 0x5d0   :  { %v884_v55 = vpop.f32.mrf.mxu0 }
 0x5ea   :  { %v1861_v20 = vpop.f32.mrf.mxu0 }
 0x5ec   :  { %v942_v21 = vpop.f32.mrf.mxu0 }
 0x5ee   :  { %v1862_v7 = vpop.f32.mrf.mxu0  ;;  %v1869_v16 = vpop.f32.mrf.mxu1 }
 0x5ef   :  { %v1943_v57 = vpack.i.bf16 %v1862_v7, %v1861_v20 }
 0x5f0   :  { %v945_v60 = vpop.f32.mrf.mxu0  ;;  %v1003_v22 = vpop.f32.mrf.mxu1 }
 0x5f1   :  { %v1953_v24 = vpack.i.bf16 %v945_v60, %v942_v21  ;;  %1944 = vrot.lane.b32.xlu1 %v1943_v57, %s2135_s23  ;;  %v2092_v21 = vld [vmem:[%s2718_s18 + $0x8] sm:$0xff] }
 0x5f2   :  { %v1870_v25 = vpop.f32.mrf.mxu1 }
 0x5f3   :  { %v1948_v26 = vpack.i.bf16 %v1870_v25, %v1869_v16  ;;  %1954 = vrot.lane.b32.xlu0 %v1953_v24, %s2135_s23  ;;  %s1559_s23 = scalar_lea.vmem [#allocation2], %s1744_s20 }
 0x5f4   :  { %v1006_v29 = vpop.f32.mrf.mxu1 }
 0x5f5   :  { %v1958_v17 = vpack.i.bf16 %v1006_v29, %v1003_v22  ;;  %1949 = vrot.lane.b32.xlu1 %v1948_v26, %s2136_s24 }
 0x5f7   :  { %1959 = vrot.lane.b32.xlu0 %v1958_v17, %s2136_s24 }
 0x62e   :  { %v1877_v30 = vpop.f32.mrf.mxu0 }
 0x630   :  { %v1064_v13 = vpop.f32.mrf.mxu0 }
 0x632   :  { %v1878_v31 = vpop.f32.mrf.mxu0 }
 0x633   :  { %v1968_v33 = vpack.i.bf16 %v1878_v31, %v1877_v30 }
 0x634   :  { %v1067_v34 = vpop.f32.mrf.mxu0 }
 0x635   :  { %v1963_v63 = vpack.i.bf16 %v1067_v34, %v1064_v13  ;;  %1969 = vrot.lane.b32.xlu1 %v1968_v33, %s2137_s27 }
 0x637   :  { %1964 = vrot.lane.b32.xlu0 %v1963_v63, %s2137_s27 }
 0x663   :  { %v1945_v47 = vpop.permute.xlu1 %1944 }
 0x664   :  { %v1947_v23 = vunpack.i.h.bf16 %v1945_v47  ;;  %v1946_v37 = vunpack.i.l.bf16 %v1945_v47 }
 0x665   :  { %v1955_v1 = vpop.permute.xlu0 %1954 }
 0x666   :  { %v1957_v27 = vunpack.i.h.bf16 %v1955_v1  ;;  %v1956_v39 = vunpack.i.l.bf16 %v1955_v1  ;;  %v1130_v9 = vsel %vm354_vm1, %v1854_v19, %v1947_v23  ;;  %v1129_v49 = vsel %vm354_vm1, %v1853_v11, %v1946_v37 }
 0x667   :  { %v1950_v10 = vpop.permute.xlu1 %1949 }
 0x668   :  { %v1952_v38 = vunpack.i.h.bf16 %v1950_v10  ;;  %v1951_v40 = vunpack.i.l.bf16 %v1950_v10  ;;  %v1128_v51 = vsel %vm354_vm1, %v884_v55, %v1957_v27  ;;  %v1127_v12 = vsel %vm354_vm1, %v881_v6, %v1956_v39  ;;  %v2091_v55 = vld [vmem:[%s2718_s18 + $0x18] sm:$0xff] }
 0x669   :  { %v1960_v18 = vpop.permute.xlu0 %1959  ;;  %vm1570_vm1 = vcmask 1040384  }
 0x66a   :  { %v1962_v42 = vunpack.i.h.bf16 %v1960_v18  ;;  %v1961_v35 = vunpack.i.l.bf16 %v1960_v18  ;;  %v1134_v48 = vsel %vm1131_vm6, %v1129_v49, %v1951_v40  ;;  %v1135_v59 = vsel %vm1131_vm6, %v1130_v9, %v1952_v38  ;;  %v1977_v40 = vld [vmem:[%s2706_s10 + $0x8] sm:$0xff]  }
 0x66b   :  { %1887 = vmatprep.subr.bf16.mxu0 %v1977_v40 }
 0x66c   :  { %v1133_v8 = vsel %vm1131_vm6, %v1128_v51, %v1962_v42  ;;  %v1132_v43 = vsel %vm1131_vm6, %v1127_v12, %v1961_v35  ;;  %v1978_v42 = vld [vmem:[%s2706_s10] sm:$0xff]   ;;  %1888 = vmatpush3.bf16.msra.mxu0 %v1977_v40  ;;  %s1549_s10 = sld [smem:[#allocation3]] }
 0x66d   :  { %1889 = vmatprep.subr.bf16.mxu0 %v1978_v42 }
 0x670   :  { %1890 = vmatpush3.bf16.msra.mxu0 %v1978_v42 }
 0x6a7   :  { %v1970_v36 = vpop.permute.xlu1 %1969 }
 0x6a8   :  { %v1972_v45 = vunpack.i.h.bf16 %v1970_v36  ;;  %v1971_v46 = vunpack.i.l.bf16 %v1970_v36 }
 0x6a9   :  { %v1965_v56 = vpop.permute.xlu0 %1964 }
 0x6aa   :  { %v1967_v61 = vunpack.i.h.bf16 %v1965_v56  ;;  %v1966_v28 = vunpack.i.l.bf16 %v1965_v56  ;;  %v1139_v32 = vsel %vm1136_vm7, %v1134_v48, %v1971_v46  ;;  %v1140_v62 = vsel %vm1136_vm7, %v1135_v59, %v1972_v45 }
 0x6ab   :  { %v1142_v0 = vpack.c.bf16 %v1140_v62, %v1139_v32 }
 0x6ac   :  { %v1138_v41 = vsel %vm1136_vm7, %v1133_v8, %v1967_v61  ;;  %v1137_v52 = vsel %vm1136_vm7, %v1132_v43, %v1966_v28  ;;  %v1722_v43 = vld [vmem:[%s2704_s8] ss:$0 sm:$0xff]  ;;  %s1550_s8 = scalar_lea.vmem [#allocation2], %s1549_s10 }
 0x6ad   :  { %v1141_v58 = vpack.c.bf16 %v1138_v41, %v1137_v52 }
 0x6af   :  { %1883 = vmatprep.mubr.msk.bf16.mxu1 %vm180_vm0, %v1141_v58 }
 0x6b0   :  { %1884 = vmatmul.mubr.msk.bf16.vlgmr.msra.gmra.mxu1 %vm180_vm0, %v1142_v0  ;;  %v1723_v0 = vld [vmem:[%s2705_s9] ss:$0 sm:$0xff] }
 0x770   :  { %v1885_v44 = vpop.f32.mrf.mxu1 }
 0x771   :  { %v1216_v54 = vadd.f32 %v2089_v15, %v1885_v44 }
 0x772   :  { %v1199_v2 = vpop.f32.mrf.mxu1 }
 0x773   :  { %v1214_v53 = vadd.f32 %v2090_v4, %v1199_v2  ;;  %v2600_v19 = vadd.f32 %v1721_v5, %v1216_v54 }
 0x774   :  { %v1886_v14 = vpop.f32.mrf.mxu1 }
 0x775   :  { %v2598_v11 = vadd.f32 %v1721_v5, %v1214_v53  ;;  %v1217_v20 = vadd.f32 %v2091_v55, %v1886_v14  ;;  %v1237_v60 = vsel %vm180_vm0, %v2600_v19, 0.0 }
 0x776   :  { %v1202_v6 = vpop.f32.mrf.mxu1 }
 0x777   :  { %v1215_v50 = vadd.f32 %v2092_v21, %v1202_v6  ;;  %v1231_v7 = vsel %vm180_vm0, %v2598_v11, 0.0  ;;  %v2612_v57 = vadd.f32 %v1721_v5, %v1217_v20  ;;  %v1979_v21 = vld [vmem:[%s2708_s12 + $0x38] sm:$0xff]  }
 0x778   :  { %1232 = vadd.xlane.f32.xlu0 %v1231_v7  ;;  %1895 = vmatprep.subr.bf16.mxu1 %v1979_v21  ;;  %v1981_v7 = vld [vmem:[%s2708_s12 + $0x28] sm:$0xff]  }
 0x779   :  { %v2610_v16 = vadd.f32 %v1721_v5, %v1215_v50  ;;  %v1240_v24 = vsel %vm180_vm0, %v2612_v57, 0.0  ;;  %1896 = vmatpush3.bf16.msra.mxu1 %v1979_v21  ;;  %v1980_v50 = vld [vmem:[%s2708_s12 + $0x30] sm:$0xff]  }
 0x77a   :  { %1897 = vmatprep.subr.bf16.mxu1 %v1980_v50 }
 0x77b   :  { %v1234_v22 = vsel %vm180_vm0, %v2610_v16, 0.0 }
 0x77c   :  { %1238 = vadd.xlane.f32.xlu0 %v1237_v60  ;;  %1235 = vadd.xlane.f32.xlu1 %v1234_v22  ;;  %v1982_v60 = vld [vmem:[%s2708_s12 + $0x20] sm:$0xff]   ;;  %v1983_v22 = vld [vmem:[%s2708_s12 + $0x18] sm:$0xff]  }
 0x77d   :  { %1898 = vmatpush3.bf16.msra.mxu1 %v1980_v50 }
 0x77e   :  { %1899 = vmatprep.subr.bf16.mxu1 %v1981_v7 }
 0x780   :  { %1241 = vadd.xlane.f32.xlu0 %v1240_v24  ;;  %v1984_v24 = vld [vmem:[%s2708_s12 + $0x10] sm:$0xff]  }
 0x781   :  { %1900 = vmatpush3.bf16.msra.mxu1 %v1981_v7 }
 0x782   :  { %1901 = vmatprep.subr.bf16.mxu1 %v1982_v60 }
 0x785   :  { %1902 = vmatpush3.bf16.msra.mxu1 %v1982_v60 }
 0x786   :  { %1903 = vmatprep.subr.bf16.mxu1 %v1983_v22 }
 0x789   :  { %1904 = vmatpush3.bf16.msra.mxu1 %v1983_v22 }
 0x78a   :  { %1905 = vmatprep.subr.bf16.mxu1 %v1984_v24 }
 0x78d   :  { %1906 = vmatpush3.bf16.msra.mxu1 %v1984_v24 }
 0x801   :  { %v1233_v25 = vpop.xlane.xlu0 %1232 }
 0x802   :  { %v1243_v26 = vmul.f32 0.03125, %v1233_v25  ;;  %v1985_v25 = vld [vmem:[%s2708_s12 + $0x8] sm:$0xff]  }
 0x803   :  { %1907 = vmatprep.subr.bf16.mxu1 %v1985_v25 }
 0x804   :  { %v1247_v29 = vsub.f32 %v2598_v11, %v1243_v26  ;;  %1908 = vmatpush3.bf16.msra.mxu1 %v1985_v25  ;;  %v1986_v26 = vld [vmem:[%s2708_s12] sm:$0xff]  }
 0x805   :  { %v1239_v17 = vpop.xlane.xlu0 %1238  ;;  %v1236_v3 = vpop.xlane.xlu1 %1235  ;;  %1909 = vmatprep.subr.bf16.mxu1 %v1986_v26 }
 0x806   :  { %v1245_v30 = vmul.f32 0.03125, %v1239_v17  ;;  %v1244_v13 = vmul.f32 0.03125, %v1236_v3  ;;  %v1251_v31 = vmul.f32 %v1247_v29, %v1247_v29 }
 0x808   :  { %v1249_v33 = vsub.f32 %v2600_v19, %v1245_v30  ;;  %v1248_v34 = vsub.f32 %v2610_v16, %v1244_v13  ;;  %v1255_v63 = vsel %vm180_vm0, %v1251_v31, 0.0  ;;  %1910 = vmatpush3.bf16.msra.mxu1 %v1986_v26 }
 0x809   :  { %1256 = vadd.xlane.f32.xlu0 %v1255_v63  ;;  %v1242_v47 = vpop.xlane.xlu0 %1241 }
 0x80a   :  { %v1246_v1 = vmul.f32 0.03125, %v1242_v47  ;;  %v1253_v10 = vmul.f32 %v1249_v33, %v1249_v33  ;;  %v1252_v18 = vmul.f32 %v1248_v34, %v1248_v34 }
 0x80c   :  { %v1250_v23 = vsub.f32 %v2612_v57, %v1246_v1  ;;  %v1261_v37 = vsel %vm180_vm0, %v1253_v10, 0.0  ;;  %v1258_v27 = vsel %vm180_vm0, %v1252_v18, 0.0 }
 0x80d   :  { %1262 = vadd.xlane.f32.xlu0 %v1261_v37  ;;  %1259 = vadd.xlane.f32.xlu1 %v1258_v27 }
 0x80e   :  { %v1254_v39 = vmul.f32 %v1250_v23, %v1250_v23 }
 0x810   :  { %v1264_v38 = vsel %vm180_vm0, %v1254_v39, 0.0 }
 0x811   :  { %1265 = vadd.xlane.f32.xlu1 %v1264_v38 }
 0x892   :  { %v1257_v35 = vpop.xlane.xlu0 %1256 }
 0x893   :  { %v1267_v36 = vmul.f32 0.03125, %v1257_v35 }
 0x895   :  { %v1271_v45 = vadd.f32 1e-05, %v1267_v36 }
 0x896   :  { %v1263_v46 = vpop.xlane.xlu0 %1262  ;;  %v1260_v9 = vpop.xlane.xlu1 %1259 }
 0x897   :  { %2061 = vrsqrt.f32 %v1271_v45  ;;  %v1269_v49 = vmul.f32 0.03125, %v1263_v46  ;;  %v1268_v51 = vmul.f32 0.03125, %v1260_v9 }
 0x899   :  { %v1273_v12 = vadd.f32 1e-05, %v1269_v49  ;;  %v1272_v56 = vadd.f32 1e-05, %v1268_v51 }
 0x89a   :  { %v1266_v48 = vpop.xlane.xlu1 %1265 }
 0x89b   :  { %2063 = vrsqrt.f32 %v1273_v12  ;;  %v1270_v59 = vmul.f32 0.03125, %v1266_v48 }
 0x89c   :  { %2065 = vrsqrt.f32 %v1272_v56 }
 0x89d   :  { %v1274_v61 = vadd.f32 1e-05, %v1270_v59 }
 0x89f   :  { %2067 = vrsqrt.f32 %v1274_v61 }
 0x8a4   :  { %v2062_v28 = vpop.eup %2061 }
 0x8a5   :  { %v1279_v8 = vmul.f32 %v2062_v28, %v1247_v29  ;;  %v1724_v29 = vld [vmem:[%s2707_s11] ss:$0 sm:$0xff] }
 0x8a7   :  { %v1289_v58 = vmul.f32 %v1722_v43, %v1279_v8 }
 0x8a8   :  { %v2064_v32 = vpop.eup %2063 }
 0x8a9   :  { %v2066_v62 = vpop.eup %2065  ;;  %v1281_v41 = vmul.f32 %v2064_v32, %v1249_v33  ;;  %v1299_v4 = vadd.f32 %v1723_v0, %v1289_v58 }
 0x8aa   :  { %v1280_v52 = vmul.f32 %v2066_v62, %v1248_v34  ;;  %v1741_v62 = vld [vmem:[%s2709_s13] ss:$0 sm:$0xff]  ;;  %s1743_s13 = sld [smem:[#allocation3 + $0x2]] }
 0x8ab   :  { %v1291_v54 = vmul.f32 %v1722_v43, %v1281_v41 }
 0x8ac   :  { %v2068_v44 = vpop.eup %2067  ;;  %v1290_v2 = vmul.f32 %v1722_v43, %v1280_v52 }
 0x8ad   :  { %v1282_v15 = vmul.f32 %v2068_v44, %v1250_v23  ;;  %v1301_v6 = vadd.f32 %v1723_v0, %v1291_v54 }
 0x8ae   :  { %v1300_v53 = vadd.f32 %v1723_v0, %v1290_v2 }
 0x8af   :  { %v1292_v5 = vmul.f32 %v1722_v43, %v1282_v15 }
 0x8b0   :  { %v1303_v14 = vpack.c.bf16 %v1300_v53, %v1299_v4  ;;  %s1556_s22 = scalar_lea.vmem [#allocation2], %s1743_s13 }
 0x8b1   :  { %v1302_v55 = vadd.f32 %v1723_v0, %v1292_v5 }
 0x8b2   :  { %1891 = vmatprep.mubr.msk.bf16.mxu0 %vm180_vm0, %v1303_v14 }
 0x8b3   :  { %v1304_v20 = vpack.c.bf16 %v1302_v55, %v1301_v6 }
 0x8b5   :  { %1892 = vmatmul.mubr.msk.bf16.vlgmr.msra.gmra.mxu0 %vm180_vm0, %v1304_v20 }
 0x975   :  { %v1893_v17 = vpop.f32.mrf.mxu0 }
 0x976   :  { %v1377_v3 = vadd.f32 %v1893_v17, %v1724_v29  ;;  %v2138_v17 = vmov 0.0  }
 0x977   :  { %v1368_v30 = vpop.f32.mrf.mxu0  ;;  %1915 = vmatprep.subr.bf16.mxu0 %v2138_v17  ;;  %1919 = vmatprep.mubr.msk.bf16.mxu0 %vm2139_vm11, %v2138_v17 }
 0x978   :  { %v1731_v13 = vmul.f32 -1.702, %v1377_v3  ;;  %v1369_v31 = vadd.f32 %v1724_v29, %v1368_v30 }
 0x979   :  { %v1894_v33 = vpop.f32.mrf.mxu0 }
 0x97a   :  { %v1395_v34 = vmul.f32 1.442695, %v1731_v13  ;;  %v1729_v63 = vmul.f32 -1.702, %v1369_v31  ;;  %v1380_v47 = vadd.f32 %v1894_v33, %v1724_v29 }
 0x97b   :  { %v1371_v1 = vpop.f32.mrf.mxu0 }
 0x97c   :  { %v1391_v10 = vmul.f32 1.442695, %v1729_v63  ;;  %v1732_v18 = vmul.f32 -1.702, %v1380_v47  ;;  %v1372_v23 = vadd.f32 %v1724_v29, %v1371_v1  ;;  %2069 = vpow2.f32 %v1395_v34  ;;  %v1987_v29 = vld [vmem:[%s2712_s16 + $0x8] sm:$0xff]  }
 0x97d   :  { %1916 = vmatpush3.bf16.msra.mxu0 %v1987_v29  ;;  %v1745_v34 = vld [vmem:[%s2710_s14] ss:$0 sm:$0xff]  ;;  %s2140_s14 = smov [#allocation6]  }
 0x97e   :  { %2071 = vpow2.f32 %v1391_v10  ;;  %v1397_v37 = vmul.f32 1.442695, %v1732_v18  ;;  %v1730_v27 = vmul.f32 -1.702, %v1372_v23  ;;  %1917 = vmatprep.subr.bf16.mxu0 %v2138_v17 }
 0x980   :  { %2073 = vpow2.f32 %v1397_v37  ;;  %v1393_v39 = vmul.f32 1.442695, %v1730_v27 }
 0x982   :  { %2075 = vpow2.f32 %v1393_v39 }
 0x989   :  { %v2070_v38 = vpop.eup %2069 }
 0x98a   :  { %v1401_v36 = vadd.f32 1.0, %v2070_v38 }
 0x98b   :  { %v2072_v40 = vpop.eup %2071 }
 0x98c   :  { %v1399_v42 = vadd.f32 1.0, %v2072_v40 }
 0x98d   :  { %v2074_v35 = vpop.eup %2073 }
 0x98e   :  { %v1402_v45 = vadd.f32 1.0, %v2074_v35  ;;  %2077 = vrcp.f32 %v1399_v42 }
 0x98f   :  { %v2076_v46 = vpop.eup %2075 }
 0x990   :  { %2079 = vrcp.f32 %v1402_v45  ;;  %v1400_v9 = vadd.f32 1.0, %v2076_v46 }
 0x991   :  { %2081 = vrcp.f32 %v1401_v36 }
 0x992   :  { %2083 = vrcp.f32 %v1400_v9 }
 0x99b   :  { %v2078_v49 = vpop.eup %2077 }
 0x99c   :  { %v1411_v59 = vmul.f32 %v2078_v49, %v1369_v31 }
 0x99d   :  { %v2080_v51 = vpop.eup %2079 }
 0x99e   :  { %v2082_v12 = vpop.eup %2081  ;;  %v1414_v48 = vmul.f32 %v2080_v51, %v1380_v47  ;;  %v1746_v47 = vld [vmem:[%s2711_s15] ss:$0 sm:$0xff] }
 0x99f   :  { %v2084_v56 = vpop.eup %2083  ;;  %v1413_v28 = vmul.f32 %v2082_v12, %v1377_v3  ;;  %v1988_v3 = vld [vmem:[%s2712_s16] sm:$0xff]   ;;  %s1681_s16 = sshll.u32 %s2140_s14, 4  ;;  %s1682_s16 = int_to_ptr.vmem [resolvable:$true] %s1681_s16 }
 0x9a0   :  { %v1412_v61 = vmul.f32 %v2084_v56, %v1372_v23  ;;  %1918 = vmatpush3.bf16.msra.mxu0 %v1988_v3  ;;  %s2105_s15 = scalar_lea.vmem %s1682_s16, 64  ;;  %p2110_p6 = scmp.lt.s32.totalorder %s1682_s16, %s1682_s16 }
 0x9a1   :  { %v1416_v43 = vpack.c.bf16 %v1414_v48, %v1413_v28  ;;  %p2106_p5 = scmp.ne.s32.totalorder %s1682_s16, %s2105_s15  ;;  %p2111_p7 = scmp.lt.s32.totalorder %s2105_s15, %s2105_s15 }
 0x9a2   :  { %v1415_v8 = vpack.c.bf16 %v1412_v61, %v1411_v59 }
 0x9a3   :  { %p2112_p8 = por %p2111_p7, %p2110_p6 }
 0x9a4   :  { %1911 = vmatprep.mubr.bf16.mxu1 %v1415_v8 }
 0x9a5   :  { %1912 = vmatmul.mubr.bf16.vlgmr.msra.gmra.mxu1 %v1416_v43  ;;  %p2113_p9 = pnand %p2112_p8, %p2106_p5 }
 0xa65   :  { %v1913_v32 = vpop.f32.mrf.mxu1 }
 0xa66   :  { %v1532_v41 = vadd.f32 %v1913_v32, %v2600_v19 }
 0xa67   :  { %v1515_v52 = vpop.f32.mrf.mxu1 }
 0xa68   :  { %v1543_v58 = vadd.f32 %v1741_v62, %v1532_v41  ;;  %v1530_v0 = vadd.f32 %v1515_v52, %v2598_v11 }
 0xa69   :  { %v1914_v44 = vpop.f32.mrf.mxu1 }
 0xa6a   :  { %1547 = vst.msk [vmem:[#allocation2 + $0x10] sm:$0xff] %vm180_vm0, %v1543_v58  ;;  %v1541_v2 = vadd.f32 %v1741_v62, %v1530_v0  ;;  %v1533_v15 = vadd.f32 %v1914_v44, %v2612_v57 }
 0xa6b   :  { %v1518_v54 = vpop.f32.mrf.mxu1 }
 0xa6c   :  { %1545 = vst.msk [vmem:[#allocation2] sm:$0xff] %vm180_vm0, %v1541_v2  ;;  %v1544_v4 = vadd.f32 %v1741_v62, %v1533_v15  ;;  %v1531_v53 = vadd.f32 %v1518_v54, %v2610_v16 }
 0xa6e   :  { %1548 = vst.msk [vmem:[#allocation2 + $0x18] sm:$0xff] %vm180_vm0, %v1544_v4  ;;  %v1542_v19 = vadd.f32 %v1741_v62, %v1531_v53 }
 0xa70   :  { %1546 = vst.msk [vmem:[#allocation2 + $0x8] sm:$0xff] %vm180_vm0, %v1542_v19 }
 0xa77   :  { %v1554_v11 = vld [vmem:[%s1553_s21] sm:$0x1] }
 0xa78   :  { %v1557_v5 = vld [vmem:[%s1556_s22] sm:$0x1]  ;;  %v1562_v14 = vrot.slane %v1554_v11, 7 }
 0xa79   :  { %v1560_v57 = vld [vmem:[%s1559_s23] sm:$0x1]  ;;  %v1565_v6 = vrot.slane %v1557_v5, 6 }
 0xa7a   :  { %v1551_v16 = vld [vmem:[%s1550_s8] sm:$0x1]  ;;  %v1568_v55 = vrot.slane %v1560_v57, 5 }
 0xa7b   :  { %v1571_v20 = vsel %vm1570_vm1, %v1551_v16, %v1562_v14 }
 0xa7c   :  { %v1573_v21 = vsel %vm1572_vm8, %v1571_v20, %v1565_v6 }
 0xa7d   :  { %v1575_v50 = vsel %vm1574_vm9, %v1573_v21, %v1568_v55 }
 0xa7e   :  { %v1579_v7 = vsel %vm1578_vm10, %v1575_v50, 0.0 }
 0xa7f   :  { %1580 = vadd.xlane.f32.xlu0 %v1579_v7 }
 0xb08   :  { %v1581_v60 = vpop.xlane.xlu0 %1580 }
 0xb09   :  { %v1582_v22 = vmul.f32 0.03125, %v1581_v60 }
 0xb0b   :  { %v1583_v24 = vsub.f32 %v1575_v50, %v1582_v22 }
 0xb0d   :  { %v1584_v25 = vmul.f32 %v1583_v24, %v1583_v24 }
 0xb0f   :  { %v1585_v26 = vsel %vm1578_vm10, %v1584_v25, 0.0 }
 0xb10   :  { %1586 = vadd.xlane.f32.xlu1 %v1585_v26 }
 0xb99   :  { %v1587_v30 = vpop.xlane.xlu1 %1586 }
 0xb9a   :  { %v1588_v13 = vmul.f32 0.03125, %v1587_v30 }
 0xb9c   :  { %v1589_v31 = vadd.f32 1e-05, %v1588_v13 }
 0xb9e   :  { %2085 = vrsqrt.f32 %v1589_v31 }
 0xbab   :  { %v2086_v33 = vpop.eup %2085 }
 0xbac   :  { %v1591_v63 = vmul.f32 %v2086_v33, %v1583_v24 }
 0xbae   :  { %v1598_v1 = vmul.f32 %v1745_v34, %v1591_v63 }
 0xbb0   :  { %v1605_v10 = vadd.f32 %v1746_v47, %v1598_v1 }
 0xbb2   :  { %v1606_v18 = vpack.c.bf16 %v1605_v10, %v1605_v10 }
 0xbb4   :  { %1920 = vmatmul.mubr.msk.bf16.vlgmr.msra.gmra.mxu0 %vm180_vm0, %v1606_v18 }
 0xc74   :  { %v1660_v23 = vpop.f32.mrf.mxu0 }
 0xc75   :  { %v1666_v37 = vmul.f32 %v1660_v23, %v1660_v23 }
 0xc76   :  { %v1921_v27 = vpop.f32.mrf.mxu0 }
 0xc77   :  { %v1668_v39 = vsel %vm1667_vm12, %v1666_v37, 0.0 }
 0xc78   :  { %1669 = vadd.xlane.f32.xlu0 %v1668_v39  ;;  %v1663_v38 = vpop.f32.mrf.mxu0 }
 0xc7a   :  { %v1922_v40 = vpop.f32.mrf.mxu0 }
 0xd01   :  { %v1670_v42 = vpop.xlane.xlu0 %1669 }
 0xd02   :  { %v1671_v35 = vadd.f32 1e-12, %v1670_v42 }
 0xd04   :  { %2087 = vrsqrt.f32 %v1671_v35 }
 0xd11   :  { %v2088_v36 = vpop.eup %2087 }
 0xd12   :  { %v1673_v45 = vmul.f32 %v2088_v36, %v1660_v23 }
 0xd14   :  { %1674 = vst.msk [vmem:[#allocation6] sm:$0xf] %vm1667_vm12, %v1673_v45 }
 0xd15   :  { %2116 = shalt.err (!%p2113_p9)
}
 0xd16   :  { %1684 = dma.vmem_to_hbm [thread:$0]  %s1682_s16, 64, %s2713_s17, [#allocation4]  }
 0xd17   :  { %2127 = dma.done.wait [#allocation4], 64  }
 0xd18   :  { %2128 = vsyncadd [#allocation4], 4294967232 }
 0xd19   :  { %1688 = vsyncpa [#allocation4], 1 }
 0xd1a   :  { %1689 = vsyncpa [#allocation5], 1 }

</bundles_post_ra>
